<compile_context>
chip_gen: v5e
topology: v5e:2x2
jax: 0.10.0
libtpu: 0.0.40
codegen_flags: <defaults>
</compile_context>

<pallas_src>
import functools
import math

import jax
import jax.numpy as jnp
from jax.experimental import pallas as pl
from jax.experimental.pallas import tpu as pltpu

VMEM_SPEC = pl.BlockSpec(memory_space=pltpu.MemorySpace.VMEM)
C_PAD = 128    # lane-dense class dimension inside the kernel (sliced in wrapper)
NS_PAD = 8     # sublane-dense span dimension inside the kernel


def _layer_norm(h, g, b, eps=1e-5):
    mu = jnp.mean(h, axis=-1, keepdims=True)
    var = jnp.mean((h - mu) ** 2, axis=-1, keepdims=True)
    return (h - mu) * jax.lax.rsqrt(var + eps) * g + b


# ---------------------------------------------------------------------------
# Fused forward kernel (single pallas_call for the whole module)
# ---------------------------------------------------------------------------
def _fused_forward_kernel(x_ref, span_ref, wqkv_ref, wo_ref, w1_ref, w2_ref,
                          ampw_ref, headw_ref, bias_ref, out1_ref, out2_ref,
                          *, n_layers, n_heads, d_k, d_ff, amp_layers,
                          embed_dim):
    f32, bf16 = jnp.float32, jnp.bfloat16
    x = x_ref[...]                       # [S, D]  f32 residual stream
    span = span_ref[...]                 # [NS_PAD, S] f32 (zero rows for padding)
    bias = bias_ref[...]                 # [rows_pad, 3*H*dk] f32 packed slab
    S = x.shape[0]
    d = embed_dim
    hdk = n_heads * d_k
    c_pad = out1_ref.shape[-1]

    # Bias-slab row layout (static offsets; layers statically unrolled):
    #   per layer l (base = 8*l): 0 bqkv | 1 bo | 2 g1 | 3 be1 | 4 bf1
    #                             5 bf2 | 6 g2 | 7 be2
    #   amp_base = 8*n_layers:    +i amp hidden bias i | +amp_layers amp-out
    #                             bias | +amp_layers+1 classifier bias
    for l in range(n_layers):
        r = 8 * l
        bqkv = bias[r + 0:r + 1, :3 * hdk]     # (1, 3*hdk); Q-part pre-scaled
        bo = bias[r + 1:r + 2, :d]
        g1 = bias[r + 2:r + 3, :d]
        be1 = bias[r + 3:r + 4, :d]
        bf1 = bias[r + 4:r + 5, :d_ff]
        bf2 = bias[r + 5:r + 6, :d]
        g2 = bias[r + 6:r + 7, :d]
        be2 = bias[r + 7:r + 8, :d]

        # --- fused QKV projection: one lane-dense [S, D] @ [D, 3*H*dk] matmul.
        # 1/sqrt(d_k) is already folded into the Q columns of wqkv / bqkv.
        qkv = jnp.dot(x.astype(bf16), wqkv_ref[l],
                      preferred_element_type=f32) + bqkv          # [S, 3*hdk]

        # --- repack to head-batched [3*H, S, dk] (batch-leading) with
        # layout-safe ops: 2-D transpose -> leading-dim split -> minor swap.
        qkv_t = qkv.T                                             # [3*hdk, S]
        heads = pltpu.einshape(
            "hds->hsd", qkv_t.reshape(3 * n_heads, d_k, S))       # [3H, S, dk]
        qh = heads[0:n_heads].astype(bf16)                        # [H, S, dk]
        kh = heads[n_heads:2 * n_heads].astype(bf16)
        vh = heads[2 * n_heads:3 * n_heads].astype(bf16)

        # --- head-batched attention (flash-style einsums, f32 softmax).
        s = jnp.einsum('hqd,hkd->hqk', qh, kh,
                       preferred_element_type=f32)                # [H, S, S]
        s = s - jnp.max(s, axis=-1, keepdims=True)
        p = jnp.exp(s)
        p = p * pl.reciprocal(jnp.sum(p, axis=-1, keepdims=True), approx=True)
        ctx = jnp.einsum('hqk,hkd->hqd', p.astype(bf16), vh,
                         preferred_element_type=f32)              # [H, S, dk]

        # --- output projection: batched per-head partials, summed over heads.
        part = jnp.einsum('hsd,hde->hse', ctx.astype(bf16), wo_ref[l],
                          preferred_element_type=f32)             # [H, S, D]
        mha = part[0]
        for h in range(1, n_heads):
            mha = mha + part[h]
        mha = mha + bo

        # --- residual + post-LN + ReLU FFN (all elementwise work stays f32).
        h1 = _layer_norm(x + mha, g1, be1)
        f = jnp.maximum(jnp.dot(h1.astype(bf16), w1_ref[l],
                                preferred_element_type=f32) + bf1, 0.0)
        f = jnp.dot(f.astype(bf16), w2_ref[l],
                    preferred_element_type=f32) + bf2
        x = _layer_norm(h1 + f, g2, be2)

    out = x                                                       # [S, D]

    # ----- Differ_Amplifier: per-token ReLU MLP -> class logits (lane-dense) --
    amp_base = 8 * n_layers
    a = out
    for i in range(amp_layers):
        b = bias[amp_base + i:amp_base + i + 1, :d]
        a = jnp.maximum(jnp.dot(a.astype(bf16), ampw_ref[i],
                                preferred_element_type=f32) + b, 0.0)
    b_out = bias[amp_base + amp_layers:amp_base + amp_layers + 1, :c_pad]
    out1_ref[...] = jnp.dot(a.astype(bf16), headw_ref[0],
                            preferred_element_type=f32) + b_out   # [S, C_PAD]

    # ----- span mean-pooling (kept f32) + classifier ------------------------
    span_emb = jnp.dot(span, out, preferred_element_type=f32)     # [NS_PAD, D]
    b_cls = bias[amp_base + amp_layers + 1:amp_base + amp_layers + 2, :c_pad]
    out2_ref[...] = jnp.dot(span_emb.astype(bf16), headw_ref[1],
                            preferred_element_type=f32) + b_cls   # [NS_PAD, C_PAD]


# ---------------------------------------------------------------------------
# Parameter construction (deterministic, stacked slabs)
# ---------------------------------------------------------------------------
def make_params(key, *, embed_dim, n_heads, n_layers, d_ff, hidden_size,
                class_num, amp_layers):
    assert hidden_size == embed_dim  # encoder output feeds DiffAmp directly
    d = embed_dim
    d_k = embed_dim                   # per torch ctor: d_k = d_v = embed_dim
    hdk = n_heads * d_k
    slab_w = 3 * hdk
    inv_sqrt_dk = 1.0 / math.sqrt(d_k)

    n_rows = 8 * n_layers + amp_layers + 2
    rows_pad = ((n_rows + 7) // 8) * 8
    bias = jnp.zeros((rows_pad, slab_w), jnp.float32)

    def init(k, shape, scale=0.05):
        return scale * jax.random.normal(k, shape, dtype=jnp.float32)

    wqkv_l, wo_l, w1_l, w2_l = [], [], [], []
    for l in range(n_layers):
        key, k1, k2, k3, k4, kb = jax.random.split(key, 6)
        wqkv = init(k1, (d, 3 * hdk))
        bqkv = init(kb, (3 * hdk,), 0.02)
        # fold 1/sqrt(d_k) into the Q third of the fused QKV weight + bias
        scale = jnp.concatenate([jnp.full((hdk,), inv_sqrt_dk, jnp.float32),
                                 jnp.ones((2 * hdk,), jnp.float32)])
        wqkv_l.append((wqkv * scale[None, :]).astype(jnp.bfloat16))
        wo_l.append(init(k2, (hdk, d)).reshape(n_heads, d_k, d)
                    .astype(jnp.bfloat16))
        w1_l.append(init(k3, (d, d_ff)).astype(jnp.bfloat16))
        w2_l.append(init(k4, (d_ff, d)).astype(jnp.bfloat16))
        r = 8 * l
        bias = bias.at[r + 0, :3 * hdk].set(bqkv * scale)
        bias = bias.at[r + 2, :d].set(1.0)    # LN1 gamma
        bias = bias.at[r + 6, :d].set(1.0)    # LN2 gamma
        # bo / beta1 / bf1 / bf2 / beta2 rows stay zero

    amp_base = 8 * n_layers
    ampw_l = []
    for i in range(amp_layers):
        key, ka, kab = jax.random.split(key, 3)
        ampw_l.append(init(ka, (hidden_size, hidden_size)).astype(jnp.bfloat16))
        bias = bias.at[amp_base + i, :hidden_size].set(
            init(kab, (hidden_size,), 0.02))

    key, ko, kob, kc, kcb = jax.random.split(key, 5)
    # class-dim weights zero-padded to C_PAD lanes so kernel stores are
    # unmasked (8,128); wrapper slices logits back to class_num.
    amp_out_w = jnp.zeros((hidden_size, C_PAD), jnp.float32)
    amp_out_w = amp_out_w.at[:, :class_num].set(
        init(ko, (hidden_size, class_num)))
    cls_w = jnp.zeros((embed_dim, C_PAD), jnp.float32)
    cls_w = cls_w.at[:, :class_num].set(init(kc, (embed_dim, class_num)))
    bias = bias.at[amp_base + amp_layers, :class_num].set(
        init(kob, (class_num,), 0.02))
    bias = bias.at[amp_base + amp_layers + 1, :class_num].set(
        init(kcb, (class_num,), 0.02))

    return {
        "n_layers": n_layers, "n_heads": n_heads, "d_k": d_k, "d_ff": d_ff,
        "amp_layers": amp_layers, "embed_dim": embed_dim,
        "wqkv": jnp.stack(wqkv_l),                       # [L, D, 3*H*dk] bf16
        "wo": jnp.stack(wo_l),                           # [L, H, dk, D]   bf16
        "w1": jnp.stack(w1_l),                           # [L, D, dff]     bf16
        "w2": jnp.stack(w2_l),                           # [L, dff, D]     bf16
        "ampw": jnp.stack(ampw_l),                       # [A, D, D]       bf16
        "headw": jnp.stack([amp_out_w, cls_w]).astype(jnp.bfloat16),  # [2,D,128]
        "bias": bias,                                    # [rows_pad, 384] f32
    }


def build_span_matrix(para_span, seq_len):
    """Row i averages combine_embeddings[span[0]-1 : span[1], :] (1-indexed, inclusive)."""
    idx = jnp.arange(seq_len)
    rows = []
    for (s, e) in para_span:
        m = ((idx >= (s - 1)) & (idx < e)).astype(jnp.float32)
        rows.append(m / jnp.maximum(jnp.sum(m), 1.0))
    return jnp.stack(rows)                               # [num_spans, S]


# ---------------------------------------------------------------------------
# Forward pass (single fused pallas_call; dropout = identity in eval mode)
# ---------------------------------------------------------------------------
def xlnet_encoder_amplifier_forward(sen_vec, span_matrix, params, *, class_num):
    # TODO(synk): pretrained XLNet + tokenizer stage (get_xlnet_represent_global)
    # has no Pallas equivalent; `sen_vec` stands in for its output.
    _, s, d = sen_vec.shape
    x = sen_vec.reshape(s, d)                            # squeeze batch=1
    ns = span_matrix.shape[0]
    ns_pad = max(NS_PAD, ((ns + 7) // 8) * 8)
    span_pad = jnp.zeros((ns_pad, s), jnp.float32).at[:ns, :].set(span_matrix)

    kernel = functools.partial(
        _fused_forward_kernel,
        n_layers=params["n_layers"], n_heads=params["n_heads"],
        d_k=params["d_k"], d_ff=params["d_ff"],
        amp_layers=params["amp_layers"], embed_dim=d)

    out1_pad, out2_pad = pl.pallas_call(
        kernel,
        out_shape=(jax.ShapeDtypeStruct((s, C_PAD), jnp.float32),
                   jax.ShapeDtypeStruct((ns_pad, C_PAD), jnp.float32)),
        in_specs=[VMEM_SPEC] * 9,
        out_specs=(VMEM_SPEC, VMEM_SPEC),
    )(x, span_pad, params["wqkv"], params["wo"], params["w1"], params["w2"],
      params["ampw"], params["headw"], params["bias"])

    class_out1 = out1_pad[:, :class_num].reshape(1, s, class_num)
    class_out2 = out2_pad[:ns, :class_num]
    return class_out1, class_out2


# ---------------------------------------------------------------------------
if __name__ == "__main__":
    # small shapes consistent with the module
    S = 8            # number of sentences (<sep> tokens)
    D = 32           # embed_dim == hidden_size
    HEADS = 4        # encoder_head
    N_LAYERS = 2     # encoder_layer
    D_FF = 64        # FFN inner dim
    CLASS_NUM = 3
    AMP_LAYERS = 2   # Amplifier_layer
    para_span = [(1, 3), (4, 6), (7, 8)]   # 1-indexed inclusive spans over S sentences

    key = jax.random.PRNGKey(0)
    k_in, k_p = jax.random.split(key)
    sen_vec = jax.random.normal(k_in, (1, S, D), dtype=jnp.float32)  # XLNet stand-in
    params = make_params(k_p, embed_dim=D, n_heads=HEADS, n_layers=N_LAYERS,
                         d_ff=D_FF, hidden_size=D, class_num=CLASS_NUM,
                         amp_layers=AMP_LAYERS)
    span_matrix = build_span_matrix(para_span, S)

    class_out1, class_out2 = xlnet_encoder_amplifier_forward(
        sen_vec, span_matrix, params, class_num=CLASS_NUM)

    jax.block_until_ready((class_out1, class_out2))
    assert class_out1.shape == (1, S, CLASS_NUM)
    assert class_out2.shape == (len(para_span), CLASS_NUM)
    assert bool(jnp.all(jnp.isfinite(class_out1)))
    assert bool(jnp.all(jnp.isfinite(class_out2)))
    print("KERNEL_OK")
</pallas_src>

<mosaic_0001>
module attributes {stable_mosaic.version = 11 : i64} {
  func.func @_fused_forward_kernel(%arg0: memref<8x32xf32, #tpu.memory_space<vmem>>, %arg1: memref<8x8xf32, #tpu.memory_space<vmem>>, %arg2: memref<2x32x384xbf16, #tpu.memory_space<vmem>>, %arg3: memref<2x4x32x32xbf16, #tpu.memory_space<vmem>>, %arg4: memref<2x32x64xbf16, #tpu.memory_space<vmem>>, %arg5: memref<2x64x32xbf16, #tpu.memory_space<vmem>>, %arg6: memref<2x32x32xbf16, #tpu.memory_space<vmem>>, %arg7: memref<2x32x128xbf16, #tpu.memory_space<vmem>>, %arg8: memref<24x384xf32, #tpu.memory_space<vmem>>, %arg9: memref<8x128xf32, #tpu.memory_space<vmem>>, %arg10: memref<8x128xf32, #tpu.memory_space<vmem>>) attributes {dimension_semantics = [], scalar_prefetch = 0 : i64, scratch_operands = 0 : i64, tpu.core_type = #tpu.core_type<tc>} {
    %c0 = arith.constant 0 : index
    %c0_0 = arith.constant 0 : index
    %0 = vector.load %arg0[%c0, %c0_0] : memref<8x32xf32, #tpu.memory_space<vmem>>, vector<8x32xf32>
    %c0_1 = arith.constant 0 : index
    %c0_2 = arith.constant 0 : index
    %1 = vector.load %arg1[%c0_1, %c0_2] : memref<8x8xf32, #tpu.memory_space<vmem>>, vector<8x8xf32>
    %c0_3 = arith.constant 0 : index
    %c0_4 = arith.constant 0 : index
    %2 = vector.load %arg8[%c0_3, %c0_4] : memref<24x384xf32, #tpu.memory_space<vmem>>, vector<24x384xf32>
    %3 = vector.extract_strided_slice %2 {offsets = [0, 0], sizes = [1, 384], strides = [1, 1]} : vector<24x384xf32> to vector<1x384xf32>
    %4 = vector.extract_strided_slice %2 {offsets = [1, 0], sizes = [1, 32], strides = [1, 1]} : vector<24x384xf32> to vector<1x32xf32>
    %5 = vector.extract_strided_slice %2 {offsets = [2, 0], sizes = [1, 32], strides = [1, 1]} : vector<24x384xf32> to vector<1x32xf32>
    %6 = vector.extract_strided_slice %2 {offsets = [3, 0], sizes = [1, 32], strides = [1, 1]} : vector<24x384xf32> to vector<1x32xf32>
    %7 = vector.extract_strided_slice %2 {offsets = [4, 0], sizes = [1, 64], strides = [1, 1]} : vector<24x384xf32> to vector<1x64xf32>
    %8 = vector.extract_strided_slice %2 {offsets = [5, 0], sizes = [1, 32], strides = [1, 1]} : vector<24x384xf32> to vector<1x32xf32>
    %9 = vector.extract_strided_slice %2 {offsets = [6, 0], sizes = [1, 32], strides = [1, 1]} : vector<24x384xf32> to vector<1x32xf32>
    %10 = vector.extract_strided_slice %2 {offsets = [7, 0], sizes = [1, 32], strides = [1, 1]} : vector<24x384xf32> to vector<1x32xf32>
    %11 = arith.truncf %0 : vector<8x32xf32> to vector<8x32xbf16>
    %c0_5 = arith.constant 0 : index
    %c0_6 = arith.constant 0 : index
    %c0_7 = arith.constant 0 : index
    %12 = vector.load %arg2[%c0_5, %c0_6, %c0_7] : memref<2x32x384xbf16, #tpu.memory_space<vmem>>, vector<1x32x384xbf16>
    %13 = vector.shape_cast %12 : vector<1x32x384xbf16> to vector<32x384xbf16>
    %cst = arith.constant dense<0.000000e+00> : vector<8x384xf32>
    %14 = tpu.matmul %11, %13, %cst {dimension_numbers = #tpu.dot_dimension_numbers<[1], [0], [0], [1], [0, 0, 1, 1], [], []>} : vector<8x32xbf16>, vector<32x384xbf16>, vector<8x384xf32> -> vector<8x384xf32>
    %15 = vector.broadcast %3 : vector<1x384xf32> to vector<8x384xf32>
    %16 = arith.addf %14, %15 : vector<8x384xf32>
    %17 = tpu.transpose %16, [1, 0] : vector<8x384xf32> -> vector<384x8xf32>
    %18 = vector.shape_cast %17 : vector<384x8xf32> to vector<12x32x8xf32>
    %19 = tpu.transpose %18, [0, 2, 1] : vector<12x32x8xf32> -> vector<12x8x32xf32>
    %20 = vector.extract_strided_slice %19 {offsets = [0, 0, 0], sizes = [4, 8, 32], strides = [1, 1, 1]} : vector<12x8x32xf32> to vector<4x8x32xf32>
    %21 = arith.truncf %20 : vector<4x8x32xf32> to vector<4x8x32xbf16>
    %22 = vector.extract_strided_slice %19 {offsets = [4, 0, 0], sizes = [4, 8, 32], strides = [1, 1, 1]} : vector<12x8x32xf32> to vector<4x8x32xf32>
    %23 = arith.truncf %22 : vector<4x8x32xf32> to vector<4x8x32xbf16>
    %24 = vector.extract_strided_slice %19 {offsets = [8, 0, 0], sizes = [4, 8, 32], strides = [1, 1, 1]} : vector<12x8x32xf32> to vector<4x8x32xf32>
    %25 = arith.truncf %24 : vector<4x8x32xf32> to vector<4x8x32xbf16>
    "tpu.trace_start"() <{level = 10 : i32, message = "hqd,hkd->hqk"}> : () -> ()
    %cst_8 = arith.constant dense<0.000000e+00> : vector<4x8x8xf32>
    %26 = tpu.matmul %21, %23, %cst_8 {dimension_numbers = #tpu.dot_dimension_numbers<[2], [2], [1], [1], [0, 0, 0, 1, 1, 1], [0], [0]>} : vector<4x8x32xbf16>, vector<4x8x32xbf16>, vector<4x8x8xf32> -> vector<4x8x8xf32>
    "tpu.trace_stop"() : () -> ()
    %cst_9 = arith.constant dense<0xFF800000> : vector<4x8xf32>
    %27 = vector.multi_reduction <maximumf>, %26, %cst_9 [2] : vector<4x8x8xf32> to vector<4x8xf32>
    %28 = vector.shape_cast %27 : vector<4x8xf32> to vector<4x8x1xf32>
    %29 = vector.broadcast %28 : vector<4x8x1xf32> to vector<4x8x8xf32>
    %30 = arith.subf %26, %29 : vector<4x8x8xf32>
    %31 = math.exp %30 : vector<4x8x8xf32>
    %cst_10 = arith.constant dense<0.000000e+00> : vector<4x8xf32>
    %32 = vector.multi_reduction <add>, %31, %cst_10 [2] : vector<4x8x8xf32> to vector<4x8xf32>
    %33 = vector.shape_cast %32 : vector<4x8xf32> to vector<4x8x1xf32>
    %34 = tpu.reciprocal %33 {approx = true} : vector<4x8x1xf32> -> vector<4x8x1xf32>
    %35 = vector.broadcast %34 : vector<4x8x1xf32> to vector<4x8x8xf32>
    %36 = arith.mulf %31, %35 : vector<4x8x8xf32>
    %37 = arith.truncf %36 : vector<4x8x8xf32> to vector<4x8x8xbf16>
    "tpu.trace_start"() <{level = 10 : i32, message = "hqk,hkd->hqd"}> : () -> ()
    %cst_11 = arith.constant dense<0.000000e+00> : vector<4x8x32xf32>
    %38 = tpu.matmul %37, %25, %cst_11 {dimension_numbers = #tpu.dot_dimension_numbers<[2], [1], [1], [2], [0, 0, 0, 1, 1, 2], [0], [0]>} : vector<4x8x8xbf16>, vector<4x8x32xbf16>, vector<4x8x32xf32> -> vector<4x8x32xf32>
    "tpu.trace_stop"() : () -> ()
    %39 = arith.truncf %38 : vector<4x8x32xf32> to vector<4x8x32xbf16>
    %c0_12 = arith.constant 0 : index
    %c0_13 = arith.constant 0 : index
    %c0_14 = arith.constant 0 : index
    %c0_15 = arith.constant 0 : index
    %40 = vector.load %arg3[%c0_12, %c0_13, %c0_14, %c0_15] : memref<2x4x32x32xbf16, #tpu.memory_space<vmem>>, vector<1x4x32x32xbf16>
    %41 = vector.shape_cast %40 : vector<1x4x32x32xbf16> to vector<4x32x32xbf16>
    "tpu.trace_start"() <{level = 10 : i32, message = "hsd,hde->hse"}> : () -> ()
    %cst_16 = arith.constant dense<0.000000e+00> : vector<4x8x32xf32>
    %42 = tpu.matmul %39, %41, %cst_16 {dimension_numbers = #tpu.dot_dimension_numbers<[2], [1], [1], [2], [0, 0, 0, 1, 1, 2], [0], [0]>} : vector<4x8x32xbf16>, vector<4x32x32xbf16>, vector<4x8x32xf32> -> vector<4x8x32xf32>
    "tpu.trace_stop"() : () -> ()
    %43 = vector.extract_strided_slice %42 {offsets = [0, 0, 0], sizes = [1, 8, 32], strides = [1, 1, 1]} : vector<4x8x32xf32> to vector<1x8x32xf32>
    %44 = vector.shape_cast %43 : vector<1x8x32xf32> to vector<8x32xf32>
    %45 = vector.extract_strided_slice %42 {offsets = [1, 0, 0], sizes = [1, 8, 32], strides = [1, 1, 1]} : vector<4x8x32xf32> to vector<1x8x32xf32>
    %46 = vector.shape_cast %45 : vector<1x8x32xf32> to vector<8x32xf32>
    %47 = arith.addf %44, %46 : vector<8x32xf32>
    %48 = vector.extract_strided_slice %42 {offsets = [2, 0, 0], sizes = [1, 8, 32], strides = [1, 1, 1]} : vector<4x8x32xf32> to vector<1x8x32xf32>
    %49 = vector.shape_cast %48 : vector<1x8x32xf32> to vector<8x32xf32>
    %50 = arith.addf %47, %49 : vector<8x32xf32>
    %51 = vector.extract_strided_slice %42 {offsets = [3, 0, 0], sizes = [1, 8, 32], strides = [1, 1, 1]} : vector<4x8x32xf32> to vector<1x8x32xf32>
    %52 = vector.shape_cast %51 : vector<1x8x32xf32> to vector<8x32xf32>
    %53 = arith.addf %50, %52 : vector<8x32xf32>
    %54 = vector.broadcast %4 : vector<1x32xf32> to vector<8x32xf32>
    %55 = arith.addf %53, %54 : vector<8x32xf32>
    %56 = arith.addf %0, %55 : vector<8x32xf32>
    %cst_17 = arith.constant dense<0.000000e+00> : vector<8xf32>
    %57 = vector.multi_reduction <add>, %56, %cst_17 [1] : vector<8x32xf32> to vector<8xf32>
    %58 = vector.shape_cast %57 : vector<8xf32> to vector<8x1xf32>
    %cst_18 = arith.constant 3.200000e+01 : f32
    %59 = vector.broadcast %cst_18 : f32 to vector<8x1xf32>
    %60 = arith.divf %58, %59 : vector<8x1xf32>
    %61 = vector.broadcast %60 : vector<8x1xf32> to vector<8x32xf32>
    %62 = arith.subf %56, %61 : vector<8x32xf32>
    %63 = arith.mulf %62, %62 : vector<8x32xf32>
    %cst_19 = arith.constant dense<0.000000e+00> : vector<8xf32>
    %64 = vector.multi_reduction <add>, %63, %cst_19 [1] : vector<8x32xf32> to vector<8xf32>
    %65 = vector.shape_cast %64 : vector<8xf32> to vector<8x1xf32>
    %cst_20 = arith.constant 3.200000e+01 : f32
    %66 = vector.broadcast %cst_20 : f32 to vector<8x1xf32>
    %67 = arith.divf %65, %66 : vector<8x1xf32>
    %68 = vector.broadcast %60 : vector<8x1xf32> to vector<8x32xf32>
    %69 = arith.subf %56, %68 : vector<8x32xf32>
    %cst_21 = arith.constant 9.99999974E-6 : f32
    %70 = vector.broadcast %cst_21 : f32 to vector<8x1xf32>
    %71 = arith.addf %67, %70 : vector<8x1xf32>
    %72 = math.rsqrt %71 : vector<8x1xf32>
    %73 = vector.broadcast %72 : vector<8x1xf32> to vector<8x32xf32>
    %74 = arith.mulf %69, %73 : vector<8x32xf32>
    %75 = vector.broadcast %5 : vector<1x32xf32> to vector<8x32xf32>
    %76 = arith.mulf %74, %75 : vector<8x32xf32>
    %77 = vector.broadcast %6 : vector<1x32xf32> to vector<8x32xf32>
    %78 = arith.addf %76, %77 : vector<8x32xf32>
    %79 = arith.truncf %78 : vector<8x32xf32> to vector<8x32xbf16>
    %c0_22 = arith.constant 0 : index
    %c0_23 = arith.constant 0 : index
    %c0_24 = arith.constant 0 : index
    %80 = vector.load %arg4[%c0_22, %c0_23, %c0_24] : memref<2x32x64xbf16, #tpu.memory_space<vmem>>, vector<1x32x64xbf16>
    %81 = vector.shape_cast %80 : vector<1x32x64xbf16> to vector<32x64xbf16>
    %cst_25 = arith.constant dense<0.000000e+00> : vector<8x64xf32>
    %82 = tpu.matmul %79, %81, %cst_25 {dimension_numbers = #tpu.dot_dimension_numbers<[1], [0], [0], [1], [0, 0, 1, 1], [], []>} : vector<8x32xbf16>, vector<32x64xbf16>, vector<8x64xf32> -> vector<8x64xf32>
    %83 = vector.broadcast %7 : vector<1x64xf32> to vector<8x64xf32>
    %84 = arith.addf %82, %83 : vector<8x64xf32>
    %cst_26 = arith.constant 0.000000e+00 : f32
    %85 = vector.broadcast %cst_26 : f32 to vector<8x64xf32>
    %86 = arith.maximumf %84, %85 : vector<8x64xf32>
    %87 = arith.truncf %86 : vector<8x64xf32> to vector<8x64xbf16>
    %c0_27 = arith.constant 0 : index
    %c0_28 = arith.constant 0 : index
    %c0_29 = arith.constant 0 : index
    %88 = vector.load %arg5[%c0_27, %c0_28, %c0_29] : memref<2x64x32xbf16, #tpu.memory_space<vmem>>, vector<1x64x32xbf16>
    %89 = vector.shape_cast %88 : vector<1x64x32xbf16> to vector<64x32xbf16>
    %cst_30 = arith.constant dense<0.000000e+00> : vector<8x32xf32>
    %90 = tpu.matmul %87, %89, %cst_30 {dimension_numbers = #tpu.dot_dimension_numbers<[1], [0], [0], [1], [0, 0, 1, 1], [], []>} : vector<8x64xbf16>, vector<64x32xbf16>, vector<8x32xf32> -> vector<8x32xf32>
    %91 = vector.broadcast %8 : vector<1x32xf32> to vector<8x32xf32>
    %92 = arith.addf %90, %91 : vector<8x32xf32>
    %93 = arith.addf %78, %92 : vector<8x32xf32>
    %cst_31 = arith.constant dense<0.000000e+00> : vector<8xf32>
    %94 = vector.multi_reduction <add>, %93, %cst_31 [1] : vector<8x32xf32> to vector<8xf32>
    %95 = vector.shape_cast %94 : vector<8xf32> to vector<8x1xf32>
    %cst_32 = arith.constant 3.200000e+01 : f32
    %96 = vector.broadcast %cst_32 : f32 to vector<8x1xf32>
    %97 = arith.divf %95, %96 : vector<8x1xf32>
    %98 = vector.broadcast %97 : vector<8x1xf32> to vector<8x32xf32>
    %99 = arith.subf %93, %98 : vector<8x32xf32>
    %100 = arith.mulf %99, %99 : vector<8x32xf32>
    %cst_33 = arith.constant dense<0.000000e+00> : vector<8xf32>
    %101 = vector.multi_reduction <add>, %100, %cst_33 [1] : vector<8x32xf32> to vector<8xf32>
    %102 = vector.shape_cast %101 : vector<8xf32> to vector<8x1xf32>
    %cst_34 = arith.constant 3.200000e+01 : f32
    %103 = vector.broadcast %cst_34 : f32 to vector<8x1xf32>
    %104 = arith.divf %102, %103 : vector<8x1xf32>
    %105 = vector.broadcast %97 : vector<8x1xf32> to vector<8x32xf32>
    %106 = arith.subf %93, %105 : vector<8x32xf32>
    %cst_35 = arith.constant 9.99999974E-6 : f32
    %107 = vector.broadcast %cst_35 : f32 to vector<8x1xf32>
    %108 = arith.addf %104, %107 : vector<8x1xf32>
    %109 = math.rsqrt %108 : vector<8x1xf32>
    %110 = vector.broadcast %109 : vector<8x1xf32> to vector<8x32xf32>
    %111 = arith.mulf %106, %110 : vector<8x32xf32>
    %112 = vector.broadcast %9 : vector<1x32xf32> to vector<8x32xf32>
    %113 = arith.mulf %111, %112 : vector<8x32xf32>
    %114 = vector.broadcast %10 : vector<1x32xf32> to vector<8x32xf32>
    %115 = arith.addf %113, %114 : vector<8x32xf32>
    %116 = vector.extract_strided_slice %2 {offsets = [8, 0], sizes = [1, 384], strides = [1, 1]} : vector<24x384xf32> to vector<1x384xf32>
    %117 = vector.extract_strided_slice %2 {offsets = [9, 0], sizes = [1, 32], strides = [1, 1]} : vector<24x384xf32> to vector<1x32xf32>
    %118 = vector.extract_strided_slice %2 {offsets = [10, 0], sizes = [1, 32], strides = [1, 1]} : vector<24x384xf32> to vector<1x32xf32>
    %119 = vector.extract_strided_slice %2 {offsets = [11, 0], sizes = [1, 32], strides = [1, 1]} : vector<24x384xf32> to vector<1x32xf32>
    %120 = vector.extract_strided_slice %2 {offsets = [12, 0], sizes = [1, 64], strides = [1, 1]} : vector<24x384xf32> to vector<1x64xf32>
    %121 = vector.extract_strided_slice %2 {offsets = [13, 0], sizes = [1, 32], strides = [1, 1]} : vector<24x384xf32> to vector<1x32xf32>
    %122 = vector.extract_strided_slice %2 {offsets = [14, 0], sizes = [1, 32], strides = [1, 1]} : vector<24x384xf32> to vector<1x32xf32>
    %123 = vector.extract_strided_slice %2 {offsets = [15, 0], sizes = [1, 32], strides = [1, 1]} : vector<24x384xf32> to vector<1x32xf32>
    %124 = arith.truncf %115 : vector<8x32xf32> to vector<8x32xbf16>
    %c1 = arith.constant 1 : index
    %c0_36 = arith.constant 0 : index
    %c0_37 = arith.constant 0 : index
    %125 = vector.load %arg2[%c1, %c0_36, %c0_37] : memref<2x32x384xbf16, #tpu.memory_space<vmem>>, vector<1x32x384xbf16>
    %126 = vector.shape_cast %125 : vector<1x32x384xbf16> to vector<32x384xbf16>
    %cst_38 = arith.constant dense<0.000000e+00> : vector<8x384xf32>
    %127 = tpu.matmul %124, %126, %cst_38 {dimension_numbers = #tpu.dot_dimension_numbers<[1], [0], [0], [1], [0, 0, 1, 1], [], []>} : vector<8x32xbf16>, vector<32x384xbf16>, vector<8x384xf32> -> vector<8x384xf32>
    %128 = vector.broadcast %116 : vector<1x384xf32> to vector<8x384xf32>
    %129 = arith.addf %127, %128 : vector<8x384xf32>
    %130 = tpu.transpose %129, [1, 0] : vector<8x384xf32> -> vector<384x8xf32>
    %131 = vector.shape_cast %130 : vector<384x8xf32> to vector<12x32x8xf32>
    %132 = tpu.transpose %131, [0, 2, 1] : vector<12x32x8xf32> -> vector<12x8x32xf32>
    %133 = vector.extract_strided_slice %132 {offsets = [0, 0, 0], sizes = [4, 8, 32], strides = [1, 1, 1]} : vector<12x8x32xf32> to vector<4x8x32xf32>
    %134 = arith.truncf %133 : vector<4x8x32xf32> to vector<4x8x32xbf16>
    %135 = vector.extract_strided_slice %132 {offsets = [4, 0, 0], sizes = [4, 8, 32], strides = [1, 1, 1]} : vector<12x8x32xf32> to vector<4x8x32xf32>
    %136 = arith.truncf %135 : vector<4x8x32xf32> to vector<4x8x32xbf16>
    %137 = vector.extract_strided_slice %132 {offsets = [8, 0, 0], sizes = [4, 8, 32], strides = [1, 1, 1]} : vector<12x8x32xf32> to vector<4x8x32xf32>
    %138 = arith.truncf %137 : vector<4x8x32xf32> to vector<4x8x32xbf16>
    "tpu.trace_start"() <{level = 10 : i32, message = "hqd,hkd->hqk"}> : () -> ()
    %cst_39 = arith.constant dense<0.000000e+00> : vector<4x8x8xf32>
    %139 = tpu.matmul %134, %136, %cst_39 {dimension_numbers = #tpu.dot_dimension_numbers<[2], [2], [1], [1], [0, 0, 0, 1, 1, 1], [0], [0]>} : vector<4x8x32xbf16>, vector<4x8x32xbf16>, vector<4x8x8xf32> -> vector<4x8x8xf32>
    "tpu.trace_stop"() : () -> ()
    %cst_40 = arith.constant dense<0xFF800000> : vector<4x8xf32>
    %140 = vector.multi_reduction <maximumf>, %139, %cst_40 [2] : vector<4x8x8xf32> to vector<4x8xf32>
    %141 = vector.shape_cast %140 : vector<4x8xf32> to vector<4x8x1xf32>
    %142 = vector.broadcast %141 : vector<4x8x1xf32> to vector<4x8x8xf32>
    %143 = arith.subf %139, %142 : vector<4x8x8xf32>
    %144 = math.exp %143 : vector<4x8x8xf32>
    %cst_41 = arith.constant dense<0.000000e+00> : vector<4x8xf32>
    %145 = vector.multi_reduction <add>, %144, %cst_41 [2] : vector<4x8x8xf32> to vector<4x8xf32>
    %146 = vector.shape_cast %145 : vector<4x8xf32> to vector<4x8x1xf32>
    %147 = tpu.reciprocal %146 {approx = true} : vector<4x8x1xf32> -> vector<4x8x1xf32>
    %148 = vector.broadcast %147 : vector<4x8x1xf32> to vector<4x8x8xf32>
    %149 = arith.mulf %144, %148 : vector<4x8x8xf32>
    %150 = arith.truncf %149 : vector<4x8x8xf32> to vector<4x8x8xbf16>
    "tpu.trace_start"() <{level = 10 : i32, message = "hqk,hkd->hqd"}> : () -> ()
    %cst_42 = arith.constant dense<0.000000e+00> : vector<4x8x32xf32>
    %151 = tpu.matmul %150, %138, %cst_42 {dimension_numbers = #tpu.dot_dimension_numbers<[2], [1], [1], [2], [0, 0, 0, 1, 1, 2], [0], [0]>} : vector<4x8x8xbf16>, vector<4x8x32xbf16>, vector<4x8x32xf32> -> vector<4x8x32xf32>
    "tpu.trace_stop"() : () -> ()
    %152 = arith.truncf %151 : vector<4x8x32xf32> to vector<4x8x32xbf16>
    %c1_43 = arith.constant 1 : index
    %c0_44 = arith.constant 0 : index
    %c0_45 = arith.constant 0 : index
    %c0_46 = arith.constant 0 : index
    %153 = vector.load %arg3[%c1_43, %c0_44, %c0_45, %c0_46] : memref<2x4x32x32xbf16, #tpu.memory_space<vmem>>, vector<1x4x32x32xbf16>
    %154 = vector.shape_cast %153 : vector<1x4x32x32xbf16> to vector<4x32x32xbf16>
    "tpu.trace_start"() <{level = 10 : i32, message = "hsd,hde->hse"}> : () -> ()
    %cst_47 = arith.constant dense<0.000000e+00> : vector<4x8x32xf32>
    %155 = tpu.matmul %152, %154, %cst_47 {dimension_numbers = #tpu.dot_dimension_numbers<[2], [1], [1], [2], [0, 0, 0, 1, 1, 2], [0], [0]>} : vector<4x8x32xbf16>, vector<4x32x32xbf16>, vector<4x8x32xf32> -> vector<4x8x32xf32>
    "tpu.trace_stop"() : () -> ()
    %156 = vector.extract_strided_slice %155 {offsets = [0, 0, 0], sizes = [1, 8, 32], strides = [1, 1, 1]} : vector<4x8x32xf32> to vector<1x8x32xf32>
    %157 = vector.shape_cast %156 : vector<1x8x32xf32> to vector<8x32xf32>
    %158 = vector.extract_strided_slice %155 {offsets = [1, 0, 0], sizes = [1, 8, 32], strides = [1, 1, 1]} : vector<4x8x32xf32> to vector<1x8x32xf32>
    %159 = vector.shape_cast %158 : vector<1x8x32xf32> to vector<8x32xf32>
    %160 = arith.addf %157, %159 : vector<8x32xf32>
    %161 = vector.extract_strided_slice %155 {offsets = [2, 0, 0], sizes = [1, 8, 32], strides = [1, 1, 1]} : vector<4x8x32xf32> to vector<1x8x32xf32>
    %162 = vector.shape_cast %161 : vector<1x8x32xf32> to vector<8x32xf32>
    %163 = arith.addf %160, %162 : vector<8x32xf32>
    %164 = vector.extract_strided_slice %155 {offsets = [3, 0, 0], sizes = [1, 8, 32], strides = [1, 1, 1]} : vector<4x8x32xf32> to vector<1x8x32xf32>
    %165 = vector.shape_cast %164 : vector<1x8x32xf32> to vector<8x32xf32>
    %166 = arith.addf %163, %165 : vector<8x32xf32>
    %167 = vector.broadcast %117 : vector<1x32xf32> to vector<8x32xf32>
    %168 = arith.addf %166, %167 : vector<8x32xf32>
    %169 = arith.addf %115, %168 : vector<8x32xf32>
    %cst_48 = arith.constant dense<0.000000e+00> : vector<8xf32>
    %170 = vector.multi_reduction <add>, %169, %cst_48 [1] : vector<8x32xf32> to vector<8xf32>
    %171 = vector.shape_cast %170 : vector<8xf32> to vector<8x1xf32>
    %cst_49 = arith.constant 3.200000e+01 : f32
    %172 = vector.broadcast %cst_49 : f32 to vector<8x1xf32>
    %173 = arith.divf %171, %172 : vector<8x1xf32>
    %174 = vector.broadcast %173 : vector<8x1xf32> to vector<8x32xf32>
    %175 = arith.subf %169, %174 : vector<8x32xf32>
    %176 = arith.mulf %175, %175 : vector<8x32xf32>
    %cst_50 = arith.constant dense<0.000000e+00> : vector<8xf32>
    %177 = vector.multi_reduction <add>, %176, %cst_50 [1] : vector<8x32xf32> to vector<8xf32>
    %178 = vector.shape_cast %177 : vector<8xf32> to vector<8x1xf32>
    %cst_51 = arith.constant 3.200000e+01 : f32
    %179 = vector.broadcast %cst_51 : f32 to vector<8x1xf32>
    %180 = arith.divf %178, %179 : vector<8x1xf32>
    %181 = vector.broadcast %173 : vector<8x1xf32> to vector<8x32xf32>
    %182 = arith.subf %169, %181 : vector<8x32xf32>
    %cst_52 = arith.constant 9.99999974E-6 : f32
    %183 = vector.broadcast %cst_52 : f32 to vector<8x1xf32>
    %184 = arith.addf %180, %183 : vector<8x1xf32>
    %185 = math.rsqrt %184 : vector<8x1xf32>
    %186 = vector.broadcast %185 : vector<8x1xf32> to vector<8x32xf32>
    %187 = arith.mulf %182, %186 : vector<8x32xf32>
    %188 = vector.broadcast %118 : vector<1x32xf32> to vector<8x32xf32>
    %189 = arith.mulf %187, %188 : vector<8x32xf32>
    %190 = vector.broadcast %119 : vector<1x32xf32> to vector<8x32xf32>
    %191 = arith.addf %189, %190 : vector<8x32xf32>
    %192 = arith.truncf %191 : vector<8x32xf32> to vector<8x32xbf16>
    %c1_53 = arith.constant 1 : index
    %c0_54 = arith.constant 0 : index
    %c0_55 = arith.constant 0 : index
    %193 = vector.load %arg4[%c1_53, %c0_54, %c0_55] : memref<2x32x64xbf16, #tpu.memory_space<vmem>>, vector<1x32x64xbf16>
    %194 = vector.shape_cast %193 : vector<1x32x64xbf16> to vector<32x64xbf16>
    %cst_56 = arith.constant dense<0.000000e+00> : vector<8x64xf32>
    %195 = tpu.matmul %192, %194, %cst_56 {dimension_numbers = #tpu.dot_dimension_numbers<[1], [0], [0], [1], [0, 0, 1, 1], [], []>} : vector<8x32xbf16>, vector<32x64xbf16>, vector<8x64xf32> -> vector<8x64xf32>
    %196 = vector.broadcast %120 : vector<1x64xf32> to vector<8x64xf32>
    %197 = arith.addf %195, %196 : vector<8x64xf32>
    %cst_57 = arith.constant 0.000000e+00 : f32
    %198 = vector.broadcast %cst_57 : f32 to vector<8x64xf32>
    %199 = arith.maximumf %197, %198 : vector<8x64xf32>
    %200 = arith.truncf %199 : vector<8x64xf32> to vector<8x64xbf16>
    %c1_58 = arith.constant 1 : index
    %c0_59 = arith.constant 0 : index
    %c0_60 = arith.constant 0 : index
    %201 = vector.load %arg5[%c1_58, %c0_59, %c0_60] : memref<2x64x32xbf16, #tpu.memory_space<vmem>>, vector<1x64x32xbf16>
    %202 = vector.shape_cast %201 : vector<1x64x32xbf16> to vector<64x32xbf16>
    %cst_61 = arith.constant dense<0.000000e+00> : vector<8x32xf32>
    %203 = tpu.matmul %200, %202, %cst_61 {dimension_numbers = #tpu.dot_dimension_numbers<[1], [0], [0], [1], [0, 0, 1, 1], [], []>} : vector<8x64xbf16>, vector<64x32xbf16>, vector<8x32xf32> -> vector<8x32xf32>
    %204 = vector.broadcast %121 : vector<1x32xf32> to vector<8x32xf32>
    %205 = arith.addf %203, %204 : vector<8x32xf32>
    %206 = arith.addf %191, %205 : vector<8x32xf32>
    %cst_62 = arith.constant dense<0.000000e+00> : vector<8xf32>
    %207 = vector.multi_reduction <add>, %206, %cst_62 [1] : vector<8x32xf32> to vector<8xf32>
    %208 = vector.shape_cast %207 : vector<8xf32> to vector<8x1xf32>
    %cst_63 = arith.constant 3.200000e+01 : f32
    %209 = vector.broadcast %cst_63 : f32 to vector<8x1xf32>
    %210 = arith.divf %208, %209 : vector<8x1xf32>
    %211 = vector.broadcast %210 : vector<8x1xf32> to vector<8x32xf32>
    %212 = arith.subf %206, %211 : vector<8x32xf32>
    %213 = arith.mulf %212, %212 : vector<8x32xf32>
    %cst_64 = arith.constant dense<0.000000e+00> : vector<8xf32>
    %214 = vector.multi_reduction <add>, %213, %cst_64 [1] : vector<8x32xf32> to vector<8xf32>
    %215 = vector.shape_cast %214 : vector<8xf32> to vector<8x1xf32>
    %cst_65 = arith.constant 3.200000e+01 : f32
    %216 = vector.broadcast %cst_65 : f32 to vector<8x1xf32>
    %217 = arith.divf %215, %216 : vector<8x1xf32>
    %218 = vector.broadcast %210 : vector<8x1xf32> to vector<8x32xf32>
    %219 = arith.subf %206, %218 : vector<8x32xf32>
    %cst_66 = arith.constant 9.99999974E-6 : f32
    %220 = vector.broadcast %cst_66 : f32 to vector<8x1xf32>
    %221 = arith.addf %217, %220 : vector<8x1xf32>
    %222 = math.rsqrt %221 : vector<8x1xf32>
    %223 = vector.broadcast %222 : vector<8x1xf32> to vector<8x32xf32>
    %224 = arith.mulf %219, %223 : vector<8x32xf32>
    %225 = vector.broadcast %122 : vector<1x32xf32> to vector<8x32xf32>
    %226 = arith.mulf %224, %225 : vector<8x32xf32>
    %227 = vector.broadcast %123 : vector<1x32xf32> to vector<8x32xf32>
    %228 = arith.addf %226, %227 : vector<8x32xf32>
    %229 = vector.extract_strided_slice %2 {offsets = [16, 0], sizes = [1, 32], strides = [1, 1]} : vector<24x384xf32> to vector<1x32xf32>
    %230 = arith.truncf %228 : vector<8x32xf32> to vector<8x32xbf16>
    %c0_67 = arith.constant 0 : index
    %c0_68 = arith.constant 0 : index
    %c0_69 = arith.constant 0 : index
    %231 = vector.load %arg6[%c0_67, %c0_68, %c0_69] : memref<2x32x32xbf16, #tpu.memory_space<vmem>>, vector<1x32x32xbf16>
    %232 = vector.shape_cast %231 : vector<1x32x32xbf16> to vector<32x32xbf16>
    %cst_70 = arith.constant dense<0.000000e+00> : vector<8x32xf32>
    %233 = tpu.matmul %230, %232, %cst_70 {dimension_numbers = #tpu.dot_dimension_numbers<[1], [0], [0], [1], [0, 0, 1, 1], [], []>} : vector<8x32xbf16>, vector<32x32xbf16>, vector<8x32xf32> -> vector<8x32xf32>
    %234 = vector.broadcast %229 : vector<1x32xf32> to vector<8x32xf32>
    %235 = arith.addf %233, %234 : vector<8x32xf32>
    %cst_71 = arith.constant 0.000000e+00 : f32
    %236 = vector.broadcast %cst_71 : f32 to vector<8x32xf32>
    %237 = arith.maximumf %235, %236 : vector<8x32xf32>
    %238 = vector.extract_strided_slice %2 {offsets = [17, 0], sizes = [1, 32], strides = [1, 1]} : vector<24x384xf32> to vector<1x32xf32>
    %239 = arith.truncf %237 : vector<8x32xf32> to vector<8x32xbf16>
    %c1_72 = arith.constant 1 : index
    %c0_73 = arith.constant 0 : index
    %c0_74 = arith.constant 0 : index
    %240 = vector.load %arg6[%c1_72, %c0_73, %c0_74] : memref<2x32x32xbf16, #tpu.memory_space<vmem>>, vector<1x32x32xbf16>
    %241 = vector.shape_cast %240 : vector<1x32x32xbf16> to vector<32x32xbf16>
    %cst_75 = arith.constant dense<0.000000e+00> : vector<8x32xf32>
    %242 = tpu.matmul %239, %241, %cst_75 {dimension_numbers = #tpu.dot_dimension_numbers<[1], [0], [0], [1], [0, 0, 1, 1], [], []>} : vector<8x32xbf16>, vector<32x32xbf16>, vector<8x32xf32> -> vector<8x32xf32>
    %243 = vector.broadcast %238 : vector<1x32xf32> to vector<8x32xf32>
    %244 = arith.addf %242, %243 : vector<8x32xf32>
    %cst_76 = arith.constant 0.000000e+00 : f32
    %245 = vector.broadcast %cst_76 : f32 to vector<8x32xf32>
    %246 = arith.maximumf %244, %245 : vector<8x32xf32>
    %247 = vector.extract_strided_slice %2 {offsets = [18, 0], sizes = [1, 128], strides = [1, 1]} : vector<24x384xf32> to vector<1x128xf32>
    %248 = arith.truncf %246 : vector<8x32xf32> to vector<8x32xbf16>
    %c0_77 = arith.constant 0 : index
    %c0_78 = arith.constant 0 : index
    %c0_79 = arith.constant 0 : index
    %249 = vector.load %arg7[%c0_77, %c0_78, %c0_79] : memref<2x32x128xbf16, #tpu.memory_space<vmem>>, vector<1x32x128xbf16>
    %250 = vector.shape_cast %249 : vector<1x32x128xbf16> to vector<32x128xbf16>
    %cst_80 = arith.constant dense<0.000000e+00> : vector<8x128xf32>
    %251 = tpu.matmul %248, %250, %cst_80 {dimension_numbers = #tpu.dot_dimension_numbers<[1], [0], [0], [1], [0, 0, 1, 1], [], []>} : vector<8x32xbf16>, vector<32x128xbf16>, vector<8x128xf32> -> vector<8x128xf32>
    %252 = vector.broadcast %247 : vector<1x128xf32> to vector<8x128xf32>
    %253 = arith.addf %251, %252 : vector<8x128xf32>
    %c0_81 = arith.constant 0 : index
    %c0_82 = arith.constant 0 : index
    %254 = vector.load %arg9[%c0_81, %c0_82] : memref<8x128xf32, #tpu.memory_space<vmem>>, vector<8x128xf32>
    tpu.vector_store %arg9[%c0_81, %c0_82], %253 {strides = array<i32>} : memref<8x128xf32, #tpu.memory_space<vmem>>, vector<8x128xf32>,
    %cst_83 = arith.constant dense<0.000000e+00> : vector<8x32xf32>
    %255 = tpu.matmul %1, %228, %cst_83 {dimension_numbers = #tpu.dot_dimension_numbers<[1], [0], [0], [1], [0, 0, 1, 1], [], []>} : vector<8x8xf32>, vector<8x32xf32>, vector<8x32xf32> -> vector<8x32xf32>
    %256 = vector.extract_strided_slice %2 {offsets = [19, 0], sizes = [1, 128], strides = [1, 1]} : vector<24x384xf32> to vector<1x128xf32>
    %257 = arith.truncf %255 : vector<8x32xf32> to vector<8x32xbf16>
    %c1_84 = arith.constant 1 : index
    %c0_85 = arith.constant 0 : index
    %c0_86 = arith.constant 0 : index
    %258 = vector.load %arg7[%c1_84, %c0_85, %c0_86] : memref<2x32x128xbf16, #tpu.memory_space<vmem>>, vector<1x32x128xbf16>
    %259 = vector.shape_cast %258 : vector<1x32x128xbf16> to vector<32x128xbf16>
    %cst_87 = arith.constant dense<0.000000e+00> : vector<8x128xf32>
    %260 = tpu.matmul %257, %259, %cst_87 {dimension_numbers = #tpu.dot_dimension_numbers<[1], [0], [0], [1], [0, 0, 1, 1], [], []>} : vector<8x32xbf16>, vector<32x128xbf16>, vector<8x128xf32> -> vector<8x128xf32>
    %261 = vector.broadcast %256 : vector<1x128xf32> to vector<8x128xf32>
    %262 = arith.addf %260, %261 : vector<8x128xf32>
    %c0_88 = arith.constant 0 : index
    %c0_89 = arith.constant 0 : index
    %263 = vector.load %arg10[%c0_88, %c0_89] : memref<8x128xf32, #tpu.memory_space<vmem>>, vector<8x128xf32>
    tpu.vector_store %arg10[%c0_88, %c0_89], %262 {strides = array<i32>} : memref<8x128xf32, #tpu.memory_space<vmem>>, vector<8x128xf32>,
    return
  }
}

</mosaic_0001>

<bundles_post_ra>
// kernel: tpu_custom_call.1
= control target key start
LH: loop header
LB: loop body
LE: loop exit
PB: predicated region body
PF: predicated region fallthrough
CT: control target
= control target key end

     0   :  { %16 = vsyncpa [#allocation3], 0  ;;  %s3729_s0 = inlined_call_operand.hbm [shape: f32[8,32], index: 0, kind: input, shape index: {}]   ;;  %s3730_s1 = inlined_call_operand.hbm [shape: f32[8,8], index: 1, kind: input, shape index: {}]   ;;  %s3731_s2 = inlined_call_operand.vmem [shape: bf16[2,32,384], index: 2, kind: input, shape index: {}]   ;;  %s3732_s3 = inlined_call_operand.hbm [shape: bf16[2,4,32,32], index: 3, kind: input, shape index: {}]   ;;  %s3733_s4 = inlined_call_operand.hbm [shape: bf16[2,32,64], index: 4, kind: input, shape index: {}]   ;;  %s3734_s5 = inlined_call_operand.vmem [shape: bf16[2,64,32], index: 5, kind: input, shape index: {}]   ;;  %s3735_s6 = inlined_call_operand.hbm [shape: bf16[2,32,32], index: 6, kind: input, shape index: {}]   ;;  %s3736_s7 = inlined_call_operand.hbm [shape: bf16[2,32,128], index: 7, kind: input, shape index: {}]   ;;  %s3737_s8 = inlined_call_operand.hbm [shape: f32[24,384], index: 8, kind: input, shape index: {}]   ;;  %s3738_s9 = inlined_call_operand.hbm [shape: f32[8,128], index: 9, kind: output, shape index: {0}]   ;;  %s3739_s10 = inlined_call_operand.hbm [shape: f32[8,128], index: 10, kind: output, shape index: {1}]  }
   0x1   :  { %17 = vsyncpa [#allocation6], 0 }
   0x2   :  { %18 = vsyncpa [#allocation9], 0 }
   0x3   :  { %19 = vsyncpa [#allocation12], 0 }
   0x4   :  { %20 = vsyncpa [#allocation4], 0  ;;  %s38_s15 = sshll.u32 %s3730_s1, 4  ;;  %s39_s15 = int_to_ptr.hbm [resolvable:$true] %s38_s15 }
   0x5   :  { %21 = vsyncpa [#allocation16], 0  ;;  %s3375_s16 = smov [#allocation5]   ;;  %s63_s20 = sshll.u32 %s3733_s4, 4  ;;  %s64_s20 = int_to_ptr.hbm [resolvable:$true] %s63_s20 }
   0x6   :  { %s40_s17 = sshll.u32 %s3375_s16, 4  ;;  %s3376_s21 = smov [#allocation8]   ;;  %s41_s17 = int_to_ptr.vmem [resolvable:$true] %s40_s17 }
   0x7   :  { %43 = dma.hbm_to_vmem [thread:$0]  %s39_s15, 128, %s41_s17, [#allocation6]  }
   0x8   :  { %s65_s22 = sshll.u32 %s3376_s21, 4  ;;  %s91_s25 = sshll.u32 %s3736_s7, 4  ;;  %s66_s22 = int_to_ptr.vmem [resolvable:$true] %s65_s22  ;;  %s92_s25 = int_to_ptr.hbm [resolvable:$true] %s91_s25 }
   0x9   :  { %s3377_s1 = smov 64   ;;  %s3378_s26 = smov 4  }
   0xa   :  { %71 = dma.hbm_to_vmem [thread:$0]  %s64_s20, 512, %s66_s22, [#allocation9], %s3377_s1, %s3377_s1, %s3378_s26  }
   0xb   :  { %s27_s29 = sshll.u32 %s3729_s0, 4  ;;  %s3379_s30 = smov [#allocation11]   ;;  %s28_s29 = int_to_ptr.hbm [resolvable:$true] %s27_s29 }
   0xc   :  { %s93_s11 = sshll.u32 %s3379_s30, 4  ;;  %s3380_s4 = smov [#allocation2]   ;;  %s94_s11 = int_to_ptr.vmem [resolvable:$true] %s93_s11 }
   0xd   :  { %99 = dma.hbm_to_vmem [thread:$0]  %s92_s25, 512, %s94_s11, [#allocation12], %s3377_s1, %s3377_s1, %s3378_s26  }
   0xe   :  { %s29_s12 = sshll.u32 %s3380_s4, 4  ;;  %s50_s7 = sshll.u32 %s3732_s3, 4  ;;  %s30_s12 = int_to_ptr.vmem [resolvable:$true] %s29_s12  ;;  %s51_s7 = int_to_ptr.hbm [resolvable:$true] %s50_s7 }
   0xf   :  { %32 = dma.hbm_to_vmem [thread:$0]  %s28_s29, 128, %s30_s12, [#allocation3]  }
  0x10   :  { %s78_s17 = sshll.u32 %s3735_s6, 4  ;;  %s3381_s18 = smov [#allocation7]   ;;  %s79_s17 = int_to_ptr.hbm [resolvable:$true] %s78_s17 }
  0x11   :  { %s52_s0 = sshll.u32 %s3381_s18, 4  ;;  %s3382_s19 = smov [#allocation10]   ;;  %s53_s0 = int_to_ptr.vmem [resolvable:$true] %s52_s0 }
  0x12   :  { %58 = dma.hbm_to_vmem [thread:$0]  %s51_s7, 2048, %s53_s0, [#allocation6], %s3377_s1, %s3377_s1, %s3378_s26  }
  0x13   :  { %s80_s20 = sshll.u32 %s3382_s19, 4  ;;  %s104_s23 = sshll.u32 %s3737_s8, 4  ;;  %s81_s20 = int_to_ptr.vmem [resolvable:$true] %s80_s20  ;;  %s105_s23 = int_to_ptr.hbm [resolvable:$true] %s104_s23 }
  0x14   :  { %86 = dma.hbm_to_vmem [thread:$0]  %s79_s17, 512, %s81_s20, [#allocation9], %s3377_s1, %s3377_s1, %s3378_s26  }
  0x15   :  { %s3383_s3 = smov [#allocation13]   ;;  %s3384_s25 = smov 384  }
  0x16   :  { %s106_s24 = sshll.u32 %s3383_s3, 4  ;;  %s3385_s27 = smov 24   ;;  %s107_s24 = int_to_ptr.vmem [resolvable:$true] %s106_s24 }
  0x17   :  { %112 = dma.hbm_to_vmem [thread:$0]  %s105_s23, 1152, %s107_s24, [#allocation12], %s3384_s25, %s3384_s25, %s3385_s27  }
  0x18   :  { %3363 = dma.done.wait [#allocation3], 128  }
  0x19   :  { %3364 = vsyncadd [#allocation3], 4294967168 }
  0x1a   :  { %3365 = dma.done.wait [#allocation6], 2176  }
  0x1b   :  { %3366 = vsyncadd [#allocation6], 4294965120 }
  0x1c   :  { %3367 = dma.done.wait [#allocation9], 1024  }
  0x1d   :  { %3368 = vsyncadd [#allocation9], 4294966272 }
  0x1e   :  { %3369 = dma.done.wait [#allocation12], 1664  }
  0x1f   :  { %3370 = vsyncadd [#allocation12], 4294965632  ;;  %v2489_v0 = vld [vmem:[%s3731_s2 + $0x18] sm:$0xf]  ;;  %v2726_v1 = vld [vmem:[%s3731_s2 + $0x20] sm:$0xf0] }
  0x20   :  { %v2725_v2 = vld [vmem:[%s3731_s2 + $0x1c] sm:$0xf]  ;;  %v2490_v3 = vor.u32 %v2726_v1, %v2489_v0  ;;  %v2491_v4 = vld [vmem:[%s3731_s2 + $0x24] sm:$0xf0]  ;;  %v2477_v5 = vld [vmem:[%s3731_s2] sm:$0xf] }
  0x21   :  { %v2723_v6 = vld [vmem:[%s3731_s2 + $0x8] sm:$0xf0]  ;;  %v2494_v7 = vor.u32 %v2725_v2, %v2491_v4  ;;  %v2722_v8 = vld [vmem:[%s3731_s2 + $0x4] sm:$0xf]  ;;  %v2479_v9 = vld [vmem:[%s3731_s2 + $0xc] sm:$0xf0] }
  0x22   :  { %205 = vmatpush.bf16.msra.mxu0 %v2490_v3  ;;  %v2478_v10 = vor.u32 %v2723_v6, %v2477_v5  ;;  %v3489_v11 = vld [vmem:[#allocation2] sm:$0xff]  ;;  %v2482_v12 = vor.u32 %v2722_v8, %v2479_v9  ;;  %vm195_vm0 = vcmask 261120   ;;  %v3499_v14 = vld [vmem:[#allocation13] sm:$0xff]  ;;  %v145_v15 = vld [vmem:[#allocation13 + $0x8] sm:$0xff]  ;;  %vm806_vm1 = vcmask 64512   ;;  %s2457_s7 = sshll.u32 %s3739_s10, 4  ;;  %s2458_s7 = int_to_ptr.hbm [resolvable:$true] %s2457_s7 }
  0x23   :  { %218 = vmatpush.bf16.msra.mxu1 %v2494_v7  ;;  %v3493_v13 = vpack.c.bf16 %v3489_v11, %v3489_v11  ;;  %v160_v16 = vperm.slane %v3499_v14, 0  ;;  %v161_v17 = vperm.slane %v145_v15, 0  ;;  %v2497_v54 = vld [vmem:[%s3731_s2 + $0x20] sm:$0xf]  ;;  %v2727_v55 = vld [vmem:[%s3731_s2 + $0x28] sm:$0xf0] }
  0x24   :  { %v2498_v59 = vor.u32 %v2727_v55, %v2497_v54  ;;  %v2485_v63 = vld [vmem:[%s3731_s2 + $0x8] sm:$0xf]  ;;  %v2724_v0 = vld [vmem:[%s3731_s2 + $0x10] sm:$0xf0]  ;;  %vm858_vm2 = vcmask 1043456   ;;  %vm1172_vm7 = vcmask 523264  }
  0x25   :  { %v2486_v2 = vor.u32 %v2724_v0, %v2485_v63  ;;  %s3388_s15 = smov [#allocation14]   ;;  %s2446_s0 = sshll.u32 %s3738_s9, 4  ;;  %s2447_s0 = int_to_ptr.hbm [resolvable:$true] %s2446_s0 }
  0x26   :  { %206 = vmatpush.bf16.msra.mxu0 %v2478_v10  ;;  %231 = vmatpush.bf16.msra.mxu2 %v2498_v59  ;;  %s2444_s16 = sshll.u32 %s3388_s15, 4  ;;  %s2445_s16 = int_to_ptr.vmem [resolvable:$true] %s2444_s16 }
  0x27   :  { %219 = vmatpush.bf16.msra.mxu1 %v2482_v12 }
  0x29   :  { %2499 = vmatmul.msk.bf16.vlgmr.msra.gmra.mxu0 %vm195_vm0, %v3493_v13 }
  0x2a   :  { %2500 = vmatmul.msk.bf16.vlgmr.msra.gmra.mxu1 %vm195_vm0, %v3493_v13  ;;  %232 = vmatpush.bf16.msra.mxu2 %v2486_v2 }
  0x2d   :  { %2501 = vmatmul.msk.bf16.vlgmr.msra.gmra.mxu2 %vm195_vm0, %v3493_v13 }
  0xa6   :  { %v208_v18 = vpop.f32.mrf.mxu0 }
  0xa7   :  { %v209_v19 = vadd.f32 %v208_v18, %v160_v16  ;;  %v221_v20 = vpop.f32.mrf.mxu1 }
  0xa8   :  { %v222_v21 = vadd.f32 %v221_v20, %v161_v17 }
  0xaa   :  { %v2785_v22 = vpack.i.bf16 %v209_v19, %v222_v21 }
  0xac   :  { %2786 = vxpose.xlu0.b32.start.end [1/1] (short) %v2785_v22, 128 }
  0xae   :  { %v210_v23 = vpop.f32.mrf.mxu0 }
  0xaf   :  { %v223_v24 = vpop.f32.mrf.mxu1 }
 0x150   :  { %v2787_v25 = vpop.trf.xlu0 }
 0x151   :  { %v2791_v4 = vunpack.i.h.bf16 %v2787_v25  ;;  %v2788_v5 = vunpack.i.l.bf16 %v2787_v25 }
 0x158   :  { %v3502_v26 = vpop.trf.xlu0 }
 0x159   :  { %v2793_v10 = vunpack.i.l.bf16 %v3502_v26  ;;  %v2796_v15 = vunpack.i.h.bf16 %v3502_v26 }
 0x160   :  { %v3504_v27 = vpop.trf.xlu0 }
 0x161   :  { %v2801_v21 = vunpack.i.h.bf16 %v3504_v27  ;;  %v2798_v13 = vunpack.i.l.bf16 %v3504_v27  ;;  %v146_v27 = vld [vmem:[#allocation13 + $0x10] sm:$0xff] }
 0x168   :  { %v3506_v28 = vpop.trf.xlu0 }
 0x169   :  { %v2806_v26 = vunpack.i.h.bf16 %v3506_v28 }
 0x170   :  { %v2807_v29 = vpop.trf.xlu0 }
 0x171   :  { %v2808_v34 = vunpack.i.l.bf16 %v2807_v29  ;;  %v2811_v35 = vunpack.i.h.bf16 %v2807_v29 }
 0x178   :  { %v2812_v30 = vpop.trf.xlu0 }
 0x179   :  { %v2816_v40 = vunpack.i.h.bf16 %v2812_v30  ;;  %v2813_v42 = vunpack.i.l.bf16 %v2812_v30  ;;  %v2803_v30 = vunpack.i.l.bf16 %v3506_v28 }
 0x180   :  { %v2817_v31 = vpop.trf.xlu0 }
 0x181   :  { %v2821_v47 = vunpack.i.h.bf16 %v2817_v31  ;;  %v2818_v49 = vunpack.i.l.bf16 %v2817_v31 }
 0x188   :  { %v2822_v32 = vpop.trf.xlu0 }
 0x189   :  { %v2826_v56 = vunpack.i.h.bf16 %v2822_v32  ;;  %v2823_v58 = vunpack.i.l.bf16 %v2822_v32 }
 0x190   :  { %v2827_v33 = vpop.trf.xlu0 }
 0x191   :  { %v2828_v36 = vunpack.i.l.bf16 %v2827_v33  ;;  %v2831_v37 = vunpack.i.h.bf16 %v2827_v33 }
 0x193   :  { %v2867_v38 = vpack.i.bf16 %v2828_v36, %v2808_v34  ;;  %v3508_v39 = vpack.i.bf16 %v2831_v37, %v2811_v35  ;;  %v162_v35 = vperm.slane %v146_v27, 0  ;;  %v234_v36 = vpop.f32.mrf.mxu2 }
 0x195   :  { %2868 = vxpose.xlu2.b32.start [1/4] (short) (narrow) %v2867_v38, 8  ;;  %v235_v37 = vadd.f32 %v234_v36, %v162_v35 }
 0x198   :  { %v2832_v41 = vpop.trf.xlu0 }
 0x199   :  { %v2836_v43 = vunpack.i.h.bf16 %v2832_v41  ;;  %v2833_v44 = vunpack.i.l.bf16 %v2832_v41 }
 0x19b   :  { %v2869_v45 = vpack.i.bf16 %v2833_v44, %v2813_v42  ;;  %v3510_v46 = vpack.i.bf16 %v2836_v43, %v2816_v40  ;;  %v236_v38 = vpop.f32.mrf.mxu2 }
 0x19d   :  { %2870 = vxpose.xlu2.b32.cont [2/4] (short) (narrow) %v2869_v45, 8 }
 0x1a0   :  { %v2837_v48 = vpop.trf.xlu0 }
 0x1a1   :  { %v2841_v50 = vunpack.i.h.bf16 %v2837_v48  ;;  %v2838_v51 = vunpack.i.l.bf16 %v2837_v48 }
 0x1a3   :  { %v2871_v52 = vpack.i.bf16 %v2838_v51, %v2818_v49  ;;  %v2910_v53 = vpack.i.bf16 %v2841_v50, %v2821_v47 }
 0x1a5   :  { %2872 = vxpose.xlu2.b32.cont [3/4] (short) (narrow) %v2871_v52, 8 }
 0x1a8   :  { %v2842_v57 = vpop.trf.xlu0 }
 0x1a9   :  { %v2846_v60 = vunpack.i.h.bf16 %v2842_v57  ;;  %v2843_v61 = vunpack.i.l.bf16 %v2842_v57 }
 0x1ab   :  { %v2873_v62 = vpack.i.bf16 %v2843_v61, %v2823_v58  ;;  %v2912_v1 = vpack.i.bf16 %v2846_v60, %v2826_v56 }
 0x1ad   :  { %2874 = vxpose.xlu2.b32.end [4/4] (short) (narrow) %v2873_v62, 8 }
 0x1b0   :  { %v2847_v3 = vpop.trf.xlu0 }
 0x1b1   :  { %v2851_v6 = vunpack.i.h.bf16 %v2847_v3  ;;  %v2848_v7 = vunpack.i.l.bf16 %v2847_v3 }
 0x1b3   :  { %v2893_v8 = vpack.i.bf16 %v2851_v6, %v2791_v4  ;;  %v2880_v9 = vpack.i.bf16 %v2848_v7, %v2788_v5 }
 0x1b5   :  { %2894 = vxpose.xlu1.b32.start [1/4] (short) (narrow) %v2893_v8, 8  ;;  %2881 = vxpose.xlu0.b32.start [1/4] (short) (narrow) %v2880_v9, 8 }
 0x1b8   :  { %v2852_v12 = vpop.trf.xlu0 }
 0x1b9   :  { %v2853_v16 = vunpack.i.l.bf16 %v2852_v12  ;;  %v2856_v17 = vunpack.i.h.bf16 %v2852_v12 }
 0x1bb   :  { %v2895_v18 = vpack.i.bf16 %v2856_v17, %v2796_v15  ;;  %v2882_v19 = vpack.i.bf16 %v2853_v16, %v2793_v10 }
 0x1bd   :  { %2896 = vxpose.xlu1.b32.cont [2/4] (short) (narrow) %v2895_v18, 8  ;;  %2883 = vxpose.xlu0.b32.cont [2/4] (short) (narrow) %v2882_v19, 8 }
 0x1c0   :  { %v2857_v20 = vpop.trf.xlu0 }
 0x1c1   :  { %v2858_v22 = vunpack.i.l.bf16 %v2857_v20  ;;  %v2861_v23 = vunpack.i.h.bf16 %v2857_v20 }
 0x1c3   :  { %v2897_v24 = vpack.i.bf16 %v2861_v23, %v2801_v21  ;;  %v2884_v25 = vpack.i.bf16 %v2858_v22, %v2798_v13 }
 0x1c5   :  { %2898 = vxpose.xlu1.b32.cont [3/4] (short) (narrow) %v2897_v24, 8  ;;  %2885 = vxpose.xlu0.b32.cont [3/4] (short) (narrow) %v2884_v25, 8 }
 0x1c8   :  { %v2862_v29 = vpop.trf.xlu0 }
 0x1c9   :  { %v2863_v31 = vunpack.i.l.bf16 %v2862_v29  ;;  %v2866_v32 = vunpack.i.h.bf16 %v2862_v29 }
 0x1cb   :  { %v2899_v33 = vpack.i.bf16 %v2866_v32, %v2806_v26  ;;  %v2886_v34 = vpack.i.bf16 %v2863_v31, %v2803_v30 }
 0x1cd   :  { %2900 = vxpose.xlu1.b32.end [4/4] (short) (narrow) %v2899_v33, 8  ;;  %2887 = vxpose.xlu0.b32.end [4/4] (short) (narrow) %v2886_v34, 8 }
 0x1d5   :  { %2907 = vxpose.xlu1.b32.start [1/4] (short) (narrow) %v3508_v39, 8  ;;  %302 = vxpose.xlu0.b32.start.end [1/1] (short) %v235_v37, 128 }
 0x1dd   :  { %2909 = vxpose.xlu1.b32.cont [2/4] (short) (narrow) %v3510_v46, 8 }
 0x1e5   :  { %2911 = vxpose.xlu1.b32.cont [3/4] (short) (narrow) %v2910_v53, 8 }
 0x1ed   :  { %2913 = vxpose.xlu1.b32.end [4/4] (short) (narrow) %v2912_v1, 8 }
 0x22e   :  { %v2875_v40 = vpop.trf.xlu2 }
 0x22f   :  { %v2876_v28 = vunpack.i.l.bf16 %v2875_v40  ;;  %v2879_v41 = vunpack.i.h.bf16 %v2875_v40 }
 0x231   :  { %v723_v42 = vpack.c.bf16 %v2876_v28, %v2876_v28  ;;  %v724_v43 = vpack.c.bf16 %v2879_v41, %v2879_v41 }
 0x233   :  { %v753_v44 = vsel %vm195_vm0, %v723_v42, 0  ;;  %v772_v45 = vsel %vm195_vm0, %v724_v43, 0 }
 0x234   :  { %762 = vmatpush.bf16.xpose.msrb.mxu0 %v753_v44  ;;  %781 = vmatpush.bf16.xpose.msrb.mxu1 %v772_v45 }
 0x259   :  { %v2888_v39 = vpop.trf.xlu0  ;;  %v2901_v48 = vpop.trf.xlu1 }
 0x25a   :  { %v2889_v46 = vunpack.i.l.bf16 %v2888_v39  ;;  %v2892_v47 = vunpack.i.h.bf16 %v2888_v39  ;;  %v2905_v53 = vunpack.i.h.bf16 %v2901_v48  ;;  %v2902_v54 = vunpack.i.l.bf16 %v2901_v48 }
 0x25c   :  { %v722_v49 = vpack.c.bf16 %v2889_v46, %v2889_v46  ;;  %v725_v50 = vpack.c.bf16 %v2892_v47, %v2892_v47  ;;  %v721_v55 = vpack.c.bf16 %v2905_v53, %v2905_v53  ;;  %v718_v56 = vpack.c.bf16 %v2902_v54, %v2902_v54 }
 0x25e   :  { %v734_v51 = vsel %vm195_vm0, %v722_v49, 0  ;;  %v791_v52 = vsel %vm195_vm0, %v725_v50, 0 }
 0x25f   :  { %743 = vmatpush.bf16.xpose.msra.mxu3 %v734_v51  ;;  %800 = vmatpush.bf16.xpose.msrb.mxu2 %v791_v52 }
 0x266   :  { %2502 = vmatmul.msk.bf16.vlgmr.msra.gmra.mxu3 %vm195_vm0, %v718_v56  ;;  %2505 = vmatmul.msk.bf16.vlgmr.msrb.gmra.mxu2 %vm195_vm0, %v721_v55 }
 0x279   :  { %v2914_v57 = vpop.trf.xlu1  ;;  %v3542_v62 = vpop.trf.xlu0 }
 0x27a   :  { %v2918_v58 = vunpack.i.h.bf16 %v2914_v57  ;;  %v2915_v59 = vunpack.i.l.bf16 %v2914_v57 }
 0x27c   :  { %v720_v60 = vpack.c.bf16 %v2918_v58, %v2918_v58  ;;  %v719_v61 = vpack.c.bf16 %v2915_v59, %v2915_v59 }
 0x27e   :  { %2503 = vmatmul.msk.bf16.vlgmr.msrb.gmra.mxu0 %vm195_vm0, %v719_v61  ;;  %2504 = vmatmul.msk.bf16.vlgmr.msrb.gmra.mxu1 %vm195_vm0, %v720_v60 }
 0x281   :  { %v3544_v63 = vpop.trf.xlu0 }
 0x289   :  { %v320_v4 = vpop.trf.xlu0 }
 0x291   :  { %v321_v7 = vpop.trf.xlu0 }
 0x299   :  { %v322_v12 = vpop.trf.xlu0 }
 0x2a1   :  { %v323_v18 = vpop.trf.xlu0 }
 0x2a9   :  { %v324_v19 = vpop.trf.xlu0 }
 0x2b1   :  { %v325_v20 = vpop.trf.xlu0 }
 0x2b9   :  { %v326_v21 = vpop.trf.xlu0 }
 0x2ba   :  { %v2932_v13 = vpack.i.bf16 %v326_v21, %v322_v12 }
 0x2c1   :  { %v327_v22 = vpop.trf.xlu0 }
 0x2c2   :  { %v2934_v23 = vpack.i.bf16 %v327_v22, %v323_v18 }
 0x2c9   :  { %v328_v24 = vpop.trf.xlu0 }
 0x2ca   :  { %v2936_v25 = vpack.i.bf16 %v328_v24, %v324_v19 }
 0x2d1   :  { %v329_v29 = vpop.trf.xlu0 }
 0x2d2   :  { %v2938_v26 = vpack.i.bf16 %v329_v29, %v325_v20  ;;  %v2728_v29 = vld [vmem:[#allocation7] sm:$0xff] }
 0x2d9   :  { %v330_v48 = vpop.trf.xlu0 }
 0x2da   :  { %v2919_v49 = vpack.i.bf16 %v330_v48, %v3542_v62 }
 0x2e1   :  { %v331_v50 = vpop.trf.xlu0 }
 0x2e2   :  { %v2921_v51 = vpack.i.bf16 %v331_v50, %v3544_v63 }
 0x2e9   :  { %v745_v0 = vpop.f32.mrf.mxu3  ;;  %v802_v1 = vpop.f32.mrf.mxu2 }
 0x2ea   :  { %v816_v2 = vsel %vm806_vm1, %v802_v1, -inf  ;;  %v807_v3 = vsel %vm806_vm1, %v745_v0, -inf  ;;  %v332_v52 = vpop.trf.xlu0 }
 0x2eb   :  { %817 = vmax.xlane.f32.xlu1 %v816_v2  ;;  %808 = vmax.xlane.f32.xlu2 %v807_v3  ;;  %v2923_v53 = vpack.i.bf16 %v332_v52, %v320_v4  ;;  %v1067_v52 = vperm.slane %v3499_v14, 1 }
 0x2f1   :  { %v747_v5 = vpop.f32.mrf.mxu3  ;;  %v804_v6 = vpop.f32.mrf.mxu2 }
 0x2f2   :  { %v333_v54 = vpop.trf.xlu0 }
 0x2f3   :  { %v2925_v55 = vpack.i.bf16 %v333_v54, %v321_v7  ;;  %v2729_v7 = vld [vmem:[#allocation7 + $0x8] sm:$0xff] }
 0x2fb   :  { %v764_v8 = vpop.f32.mrf.mxu0  ;;  %v783_v9 = vpop.f32.mrf.mxu1 }
 0x2fc   :  { %v810_v10 = vsel %vm806_vm1, %v764_v8, -inf  ;;  %v813_v17 = vsel %vm806_vm1, %v783_v9, -inf }
 0x2fd   :  { %811 = vmax.xlane.f32.xlu2 %v810_v10 }
 0x303   :  { %v766_v15 = vpop.f32.mrf.mxu0  ;;  %v785_v16 = vpop.f32.mrf.mxu1 }
 0x305   :  { %814 = vmax.xlane.f32.xlu2 %v813_v17 }
 0x35e   :  { %v818_v30 = vpop.xlane.xlu1 %817  ;;  %v809_v31 = vpop.xlane.xlu2 %808 }
 0x35f   :  { %v822_v32 = vsub.f32 %v802_v1, %v818_v30  ;;  %v819_v33 = vsub.f32 %v745_v0, %v809_v31  ;;  %v2731_v30 = vld [vmem:[#allocation7 + $0x18] sm:$0xff]  ;;  %v2733_v31 = vld [vmem:[#allocation7 + $0x28] sm:$0xff] }
 0x361   :  { %v829_v34 = vmul.f32 1.442695, %v822_v32  ;;  %v823_v27 = vmul.f32 1.442695, %v819_v33 }
 0x363   :  { %3105 = vpow2.f32 %v829_v34 }
 0x364   :  { %3107 = vpow2.f32 %v823_v27 }
 0x369   :  { %v3106_v35 = vpop.eup %3105 }
 0x36a   :  { %v3108_v36 = vpop.eup %3107  ;;  %v840_v37 = vsel %vm806_vm1, %v3106_v35, 0.0 }
 0x36b   :  { %841 = vadd.xlane.f32.xlu2 %v840_v37  ;;  %v831_v38 = vsel %vm806_vm1, %v3108_v36, 0.0  ;;  %v2730_v37 = vld [vmem:[#allocation7 + $0x10] sm:$0xff] }
 0x36c   :  { %832 = vadd.xlane.f32.xlu1 %v831_v38  ;;  %v2732_v38 = vld [vmem:[#allocation7 + $0x20] sm:$0xff] }
 0x370   :  { %v812_v40 = vpop.xlane.xlu2 %811 }
 0x371   :  { %v820_v28 = vsub.f32 %v764_v8, %v812_v40  ;;  %v2735_v8 = vld [vmem:[#allocation7 + $0x38] sm:$0xff] }
 0x373   :  { %v825_v41 = vmul.f32 1.442695, %v820_v28 }
 0x375   :  { %3109 = vpow2.f32 %v825_v41 }
 0x378   :  { %v815_v42 = vpop.xlane.xlu2 %814 }
 0x379   :  { %v821_v43 = vsub.f32 %v783_v9, %v815_v42 }
 0x37b   :  { %v3110_v44 = vpop.eup %3109  ;;  %v827_v45 = vmul.f32 1.442695, %v821_v43 }
 0x37c   :  { %v834_v39 = vsel %vm806_vm1, %v3110_v44, 0.0 }
 0x37d   :  { %3111 = vpow2.f32 %v827_v45  ;;  %835 = vadd.xlane.f32.xlu0 %v834_v39 }
 0x383   :  { %v3112_v46 = vpop.eup %3111 }
 0x384   :  { %v837_v47 = vsel %vm806_vm1, %v3112_v46, 0.0 }
 0x385   :  { %838 = vadd.xlane.f32.xlu1 %v837_v47 }
 0x394   :  { %2920 = vxpose.xlu2.b32.start [1/4] (short) (narrow) %v2919_v49, 8 }
 0x39c   :  { %2922 = vxpose.xlu2.b32.cont [2/4] (short) (narrow) %v2921_v51, 8 }
 0x3a4   :  { %2924 = vxpose.xlu2.b32.cont [3/4] (short) (narrow) %v2923_v53, 8 }
 0x3ac   :  { %2926 = vxpose.xlu2.b32.end [4/4] (short) (narrow) %v2925_v55, 8 }
 0x3bf   :  { %2933 = vxpose.xlu1.b32.start [1/4] (short) (narrow) %v2932_v13, 8 }
 0x3c7   :  { %2935 = vxpose.xlu1.b32.cont [2/4] (short) (narrow) %v2934_v23, 8 }
 0x3cf   :  { %2937 = vxpose.xlu1.b32.cont [3/4] (short) (narrow) %v2936_v25, 8 }
 0x3d7   :  { %2939 = vxpose.xlu1.b32.end [4/4] (short) (narrow) %v2938_v26, 8  ;;  %v2734_v26 = vld [vmem:[#allocation7 + $0x30] sm:$0xff] }
 0x3de   :  { %v842_v56 = vpop.xlane.xlu2 %841 }
 0x3df   :  { %v833_v57 = vpop.xlane.xlu1 %832  ;;  %3113 = vrcp.f32 %v842_v56 }
 0x3e0   :  { %3115 = vrcp.f32 %v833_v57 }
 0x3e5   :  { %v3114_v58 = vpop.eup %3113 }
 0x3e6   :  { %v3116_v59 = vpop.eup %3115  ;;  %v850_v0 = vmul.f32 %v3114_v58, %v3106_v35 }
 0x3e7   :  { %v847_v63 = vmul.f32 %v3116_v59, %v3108_v36  ;;  %v3386_v59 = vmov 32.0  }
 0x3e8   :  { %v854_v5 = vpack.c.bf16 %v850_v0, %v850_v0 }
 0x3e9   :  { %v851_v6 = vpack.c.bf16 %v847_v63, %v847_v63 }
 0x3f0   :  { %v836_v9 = vpop.xlane.xlu0 %835 }
 0x3f1   :  { %3117 = vrcp.f32 %v836_v9 }
 0x3f7   :  { %v3118_v12 = vpop.eup %3117 }
 0x3f8   :  { %v839_v10 = vpop.xlane.xlu1 %838  ;;  %v848_v19 = vmul.f32 %v3118_v12, %v3110_v44  ;;  %v2740_v12 = vld [vmem:[%s3734_s5 + $0x10] sm:$0xff] }
 0x3f9   :  { %3119 = vrcp.f32 %v839_v10 }
 0x3fa   :  { %v852_v24 = vpack.c.bf16 %v848_v19, %v848_v19  ;;  %3121 = vrcp.f32 %v3386_v59 }
 0x3ff   :  { %v3120_v15 = vpop.eup %3119 }
 0x400   :  { %v849_v20 = vmul.f32 %v3120_v15, %v3112_v46 }
 0x402   :  { %v853_v25 = vpack.c.bf16 %v849_v20, %v849_v20 }
 0x42d   :  { %v2927_v60 = vpop.trf.xlu2 }
 0x42e   :  { %v2931_v61 = vunpack.i.h.bf16 %v2927_v60  ;;  %v2928_v62 = vunpack.i.l.bf16 %v2927_v60  ;;  %v3122_v60 = vpop.eup %3121 }
 0x42f   :  { %vm1078_vm3 = vweird.f32 %v3122_v60 }
 0x430   :  { %v726_v1 = vpack.c.bf16 %v2928_v62, %v2928_v62  ;;  %v729_v2 = vpack.c.bf16 %v2931_v61, %v2931_v61  ;;  %v1074_v61 = vmul.f32 32.0, %v3122_v60 }
 0x432   :  { %v860_v3 = vsel %vm858_vm2, %v726_v1, 0  ;;  %v917_v4 = vsel %vm858_vm2, %v729_v2, 0  ;;  %v1075_v62 = vsub.f32 1.0, %v1074_v61  ;;  %v2590_v61 = vld [vmem:[%s3731_s2 + $0x38] sm:$0xf] }
 0x433   :  { %869 = vmatpush.bf16.msrb.mxu3 %v860_v3  ;;  %926 = vmatpush.bf16.msra.mxu2 %v917_v4 }
 0x434   :  { %v1076_v63 = vmul.f32 %v3122_v60, %v1075_v62  ;;  %v2744_v62 = vld [vmem:[%s3731_s2 + $0x40] sm:$0xf0] }
 0x436   :  { %2506 = vmatmul.msk.bf16.vlgmr.msrb.gmra.mxu3 %vm806_vm1, %v851_v6  ;;  %2509 = vmatmul.msk.bf16.vlgmr.msra.gmra.mxu2 %vm806_vm1, %v854_v5  ;;  %v1077_v0 = vadd.f32 %v3122_v60, %v1076_v63  ;;  %v2737_v6 = vld [vmem:[#allocation8 + $0x8] sm:$0xff] }
 0x437   :  { %973 = vmatpush.bf16.msra.mxu3 %v2729_v7  ;;  %1057 = vmatpush.bf16.msrb.mxu2 %v2735_v8  ;;  %v2736_v7 = vld [vmem:[#allocation8] sm:$0xff]  ;;  %v2741_v8 = vld [vmem:[%s3734_s5 + $0x18] sm:$0xff] }
 0x438   :  { %v3571_v1 = vsel %vm1078_vm3, %v3122_v60, %v1077_v0  ;;  %v2584_v60 = vld [vmem:[%s3731_s2 + $0x3c] sm:$0xf0]  ;;  %v2591_v0 = vor.u32 %v2744_v62, %v2590_v61 }
 0x43b   :  { %974 = vmatpush.bf16.msra.mxu3 %v2728_v29  ;;  %1058 = vmatpush.bf16.msrb.mxu2 %v2734_v26 }
 0x43f   :  { %1130 = vmatpush.bf16.msrb.mxu3 %v2737_v6 }
 0x443   :  { %1131 = vmatpush.bf16.msrb.mxu3 %v2736_v7 }
 0x463   :  { %v2940_v16 = vpop.trf.xlu1 }
 0x464   :  { %v2944_v17 = vunpack.i.h.bf16 %v2940_v16  ;;  %v2941_v18 = vunpack.i.l.bf16 %v2940_v16 }
 0x466   :  { %v727_v21 = vpack.c.bf16 %v2941_v18, %v2941_v18  ;;  %v728_v13 = vpack.c.bf16 %v2944_v17, %v2944_v17 }
 0x468   :  { %v879_v22 = vsel %vm858_vm2, %v727_v21, 0  ;;  %v898_v23 = vsel %vm858_vm2, %v728_v13, 0  ;;  %v1099_v13 = vperm.slane %v3499_v14, 2 }
 0x469   :  { %888 = vmatpush.bf16.msra.mxu0 %v879_v22  ;;  %907 = vmatpush.bf16.msra.mxu1 %v898_v23  ;;  %v1101_v23 = vperm.slane %v3499_v14, 3 }
 0x46c   :  { %2507 = vmatmul.msk.bf16.vlgmr.msra.gmra.mxu0 %vm806_vm1, %v852_v24  ;;  %2508 = vmatmul.msk.bf16.vlgmr.msra.gmra.mxu1 %vm806_vm1, %v853_v25 }
 0x46d   :  { %1001 = vmatpush.bf16.msrb.mxu0 %v2731_v30  ;;  %1029 = vmatpush.bf16.msrb.mxu1 %v2733_v31  ;;  %v2739_v30 = vld [vmem:[%s3734_s5 + $0x8] sm:$0xff]  ;;  %v2738_v31 = vld [vmem:[%s3734_s5] sm:$0xff] }
 0x471   :  { %1002 = vmatpush.bf16.msrb.mxu0 %v2730_v37  ;;  %1030 = vmatpush.bf16.msrb.mxu1 %v2732_v38  ;;  %v1147_v37 = vperm.slane %v3499_v14, 5 }
 0x475   :  { %1180 = vmatpush.bf16.msra.mxu0 %v2741_v8 }
 0x479   :  { %1181 = vmatpush.bf16.msra.mxu0 %v2740_v12 }
 0x47d   :  { %1182 = vmatpush.bf16.msra.mxu0 %v2739_v30 }
 0x481   :  { %1183 = vmatpush.bf16.msra.mxu0 %v2738_v31 }
 0x4b9   :  { %v871_v32 = vpop.f32.mrf.mxu3  ;;  %v928_v33 = vpop.f32.mrf.mxu2 }
 0x4ba   :  { %v932_v34 = vpack.c.bf16 %v871_v32, %v871_v32  ;;  %v935_v27 = vpack.c.bf16 %v928_v33, %v928_v33  ;;  %v1108_v32 = vperm.slane %v3499_v14, 4 }
 0x4bc   :  { %2518 = vmatmul.msk.bf16.vlgmr.msra.gmra.mxu3 %vm195_vm0, %v932_v34  ;;  %2545 = vmatmul.msk.bf16.vlgmr.msrb.gmra.mxu2 %vm195_vm0, %v935_v27 }
 0x4c1   :  { %v873_v35 = vpop.f32.mrf.mxu3  ;;  %v930_v36 = vpop.f32.mrf.mxu2 }
 0x4e9   :  { %v890_v40 = vpop.f32.mrf.mxu0  ;;  %v909_v28 = vpop.f32.mrf.mxu1 }
 0x4ea   :  { %v933_v41 = vpack.c.bf16 %v890_v40, %v890_v40  ;;  %v934_v42 = vpack.c.bf16 %v909_v28, %v909_v28 }
 0x4ec   :  { %2527 = vmatmul.msk.bf16.vlgmr.msrb.gmra.mxu0 %vm195_vm0, %v933_v41  ;;  %2536 = vmatmul.msk.bf16.vlgmr.msrb.gmra.mxu1 %vm195_vm0, %v934_v42 }
 0x4f1   :  { %v892_v43 = vpop.f32.mrf.mxu0  ;;  %v911_v44 = vpop.f32.mrf.mxu1 }
 0x53f   :  { %v976_v45 = vpop.f32.mrf.mxu3  ;;  %v1060_v39 = vpop.f32.mrf.mxu2 }
 0x547   :  { %v978_v46 = vpop.f32.mrf.mxu3  ;;  %v1062_v47 = vpop.f32.mrf.mxu2 }
 0x548   :  { %v2594_v47 = vld [vmem:[%s3731_s2 + $0x48] sm:$0xf] }
 0x569   :  { %v1004_v48 = vpop.f32.mrf.mxu0  ;;  %v1032_v49 = vpop.f32.mrf.mxu1 }
 0x56a   :  { %v1064_v50 = vadd.f32 %v1004_v48, %v976_v45  ;;  %v2746_v48 = vld [vmem:[%s3731_s2 + $0x50] sm:$0xf0] }
 0x56c   :  { %v1065_v51 = vadd.f32 %v1064_v50, %v1032_v49  ;;  %v2745_v49 = vld [vmem:[%s3731_s2 + $0x4c] sm:$0xf]  ;;  %v2595_v50 = vor.u32 %v2746_v48, %v2594_v47 }
 0x56e   :  { %v1066_v53 = vadd.f32 %v1065_v51, %v1060_v39  ;;  %v2596_v51 = vld [vmem:[%s3731_s2 + $0x54] sm:$0xf0]  ;;  %1270 = vmatpush.bf16.msra.mxu1 %v2595_v50 }
 0x570   :  { %v1068_v54 = vadd.f32 %v1067_v52, %v1066_v53  ;;  %v2602_v52 = vld [vmem:[%s3731_s2 + $0x50] sm:$0xf]  ;;  %v2747_v53 = vld [vmem:[%s3731_s2 + $0x58] sm:$0xf0] }
 0x571   :  { %v1006_v55 = vpop.f32.mrf.mxu0  ;;  %v1034_v56 = vpop.f32.mrf.mxu1 }
 0x572   :  { %v1069_v57 = vadd.f32 %v1068_v54, %v3489_v11  ;;  %v2599_v54 = vor.u32 %v2745_v49, %v2596_v51  ;;  %v2603_v55 = vor.u32 %v2747_v53, %v2602_v52  ;;  %v2582_v56 = vld [vmem:[%s3731_s2 + $0x30] sm:$0xf] }
 0x574   :  { %v1070_v58 = vsel %vm195_vm0, %v1069_v57, 0.0  ;;  %1283 = vmatpush.bf16.msra.mxu2 %v2599_v54  ;;  %1296 = vmatpush.bf16.msra.mxu3 %v2603_v55 }
 0x575   :  { %1071 = vadd.xlane.f32.xlu2 %v1070_v58  ;;  %v2742_v58 = vld [vmem:[%s3731_s2 + $0x34] sm:$0xf] }
 0x576   :  { %v2587_v63 = vor.u32 %v2742_v58, %v2584_v60 }
 0x578   :  { %1284 = vmatpush.bf16.msra.mxu2 %v2587_v63  ;;  %1297 = vmatpush.bf16.msra.mxu3 %v2591_v0 }
 0x5e8   :  { %v1072_v2 = vpop.xlane.xlu2 %1071 }
 0x5e9   :  { %v1080_v3 = vmul.f32 %v3571_v1, %v1072_v2 }
 0x5eb   :  { %v1081_v4 = vsub.f32 %v1069_v57, %v1080_v3  ;;  %v2743_v57 = vld [vmem:[%s3731_s2 + $0x38] sm:$0xf0] }
 0x5ec   :  { %v2583_v59 = vor.u32 %v2743_v57, %v2582_v56 }
 0x5ed   :  { %v1082_v5 = vmul.f32 %v1081_v4, %v1081_v4 }
 0x5ee   :  { %1271 = vmatpush.bf16.msra.mxu1 %v2583_v59 }
 0x5ef   :  { %v1083_v11 = vsel %vm195_vm0, %v1082_v5, 0.0 }
 0x5f0   :  { %1084 = vadd.xlane.f32.xlu1 %v1083_v11 }
 0x663   :  { %v1085_v9 = vpop.xlane.xlu1 %1084 }
 0x664   :  { %v1086_v10 = vmul.f32 %v1085_v9, %v3571_v1 }
 0x666   :  { %v1087_v15 = vadd.f32 1e-05, %v1086_v10  ;;  %v1212_v10 = vperm.slane %v3499_v14, 6 }
 0x668   :  { %3123 = vrsqrt.f32 %v1087_v15  ;;  %vm1094_vm5 = vweird.f32 %v1087_v15 }
 0x66e   :  { %v3124_v16 = vpop.eup %3123 }
 0x66f   :  { %v1089_v17 = vmul.f32 %v3124_v16, %v1087_v15  ;;  %vm1095_vm4 = vweird.f32 %v3124_v16  ;;  %v1214_v15 = vperm.slane %v3499_v14, 7 }
 0x670   :  { %vm1096_vm6 = vmor %vm1094_vm5, %vm1095_vm4 }
 0x671   :  { %v1090_v18 = vmul.f32 %v3124_v16, %v1089_v17 }
 0x673   :  { %v1091_v19 = vmul.f32 0.5, %v1090_v18 }
 0x675   :  { %v1092_v20 = vsub.f32 1.5, %v1091_v19 }
 0x677   :  { %v1093_v21 = vmul.f32 %v3124_v16, %v1092_v20  ;;  %v3643_v20 = vld [vmem:[#allocation13 + $0x18] sm:$0xff] }
 0x679   :  { %v1097_v22 = vsel %vm1096_vm6, %v3124_v16, %v1093_v21 }
 0x67a   :  { %v1098_v24 = vmul.f32 %v1097_v22, %v1081_v4  ;;  %v1226_v22 = vperm.slane %v3643_v20, 0 }
 0x67c   :  { %v1100_v25 = vmul.f32 %v1099_v13, %v1098_v24  ;;  %v148_v13 = vld [vmem:[#allocation13 + $0x20] sm:$0xff] }
 0x67d   :  { %v1227_v14 = vperm.slane %v148_v13, 0 }
 0x67e   :  { %v1102_v29 = vadd.f32 %v1101_v23, %v1100_v25 }
 0x680   :  { %v1103_v26 = vpack.c.bf16 %v1102_v29, %v1102_v29 }
 0x682   :  { %2554 = vmatmul.msk.bf16.vlgmr.msrb.gmra.mxu3 %vm195_vm0, %v1103_v26 }
 0x705   :  { %v1133_v33 = vpop.f32.mrf.mxu3 }
 0x706   :  { %v1134_v34 = vadd.f32 %v1133_v33, %v1108_v32 }
 0x708   :  { %v1137_v27 = vmax.f32 %v1134_v34, 0.0 }
 0x70a   :  { %v1138_v35 = vpack.c.bf16 %v1137_v27, %v1137_v27 }
 0x70c   :  { %2571 = vmatmul.msk.bf16.vlgmr.msra.gmra.mxu0 %vm1172_vm7, %v1138_v35 }
 0x70d   :  { %v1135_v36 = vpop.f32.mrf.mxu3 }
 0x789   :  { %v1185_v38 = vpop.f32.mrf.mxu0 }
 0x78a   :  { %v1186_v40 = vadd.f32 %v1185_v38, %v1147_v37 }
 0x78c   :  { %v1189_v28 = vadd.f32 %v1186_v40, %v1102_v29 }
 0x78e   :  { %v1190_v41 = vsel %vm195_vm0, %v1189_v28, 0.0 }
 0x78f   :  { %1191 = vadd.xlane.f32.xlu2 %v1190_v41 }
 0x791   :  { %v1187_v42 = vpop.f32.mrf.mxu0 }
 0x802   :  { %v1192_v43 = vpop.xlane.xlu2 %1191 }
 0x803   :  { %v1193_v44 = vmul.f32 %v1192_v43, %v3571_v1 }
 0x805   :  { %v1194_v45 = vsub.f32 %v1189_v28, %v1193_v44 }
 0x807   :  { %v1195_v39 = vmul.f32 %v1194_v45, %v1194_v45 }
 0x809   :  { %v1196_v46 = vsel %vm195_vm0, %v1195_v39, 0.0 }
 0x80a   :  { %1197 = vadd.xlane.f32.xlu1 %v1196_v46 }
 0x87d   :  { %v1198_v2 = vpop.xlane.xlu1 %1197 }
 0x87e   :  { %v1199_v3 = vmul.f32 %v1198_v2, %v3571_v1 }
 0x880   :  { %v1200_v4 = vadd.f32 1e-05, %v1199_v3 }
 0x882   :  { %3125 = vrsqrt.f32 %v1200_v4  ;;  %vm1207_vm9 = vweird.f32 %v1200_v4 }
 0x888   :  { %v3126_v5 = vpop.eup %3125 }
 0x889   :  { %v1202_v11 = vmul.f32 %v3126_v5, %v1200_v4  ;;  %vm1208_vm8 = vweird.f32 %v3126_v5 }
 0x88a   :  { %vm1209_vm10 = vmor %vm1207_vm9, %vm1208_vm8 }
 0x88b   :  { %v1203_v6 = vmul.f32 %v3126_v5, %v1202_v11 }
 0x88d   :  { %v1204_v7 = vmul.f32 0.5, %v1203_v6 }
 0x88f   :  { %v1205_v8 = vsub.f32 1.5, %v1204_v7 }
 0x891   :  { %v1206_v9 = vmul.f32 %v3126_v5, %v1205_v8 }
 0x893   :  { %v1210_v12 = vsel %vm1209_vm10, %v3126_v5, %v1206_v9 }
 0x894   :  { %v1211_v16 = vmul.f32 %v1210_v12, %v1194_v45 }
 0x896   :  { %v1213_v17 = vmul.f32 %v1212_v10, %v1211_v16 }
 0x898   :  { %v3636_v18 = vadd.f32 %v1214_v15, %v1213_v17 }
 0x89a   :  { %v1216_v19 = vpack.c.bf16 %v3636_v18, %v3636_v18 }
 0x89c   :  { %2604 = vmatmul.msk.bf16.vlgmr.msra.gmra.mxu1 %vm195_vm0, %v1216_v19  ;;  %2605 = vmatmul.msk.bf16.vlgmr.msra.gmra.mxu2 %vm195_vm0, %v1216_v19 }
 0x89d   :  { %2606 = vmatmul.msk.bf16.vlgmr.msra.gmra.mxu3 %vm195_vm0, %v1216_v19 }
 0x919   :  { %v1273_v21 = vpop.f32.mrf.mxu1 }
 0x91a   :  { %v1274_v24 = vadd.f32 %v1273_v21, %v1226_v22 }
 0x91f   :  { %v1286_v23 = vpop.f32.mrf.mxu2 }
 0x920   :  { %v1287_v25 = vadd.f32 %v1286_v23, %v1227_v14  ;;  %v3646_v29 = vpop.f32.mrf.mxu3 }
 0x921   :  { %v1275_v26 = vpop.f32.mrf.mxu1 }
 0x922   :  { %v2945_v30 = vpack.i.bf16 %v1274_v24, %v1287_v25 }
 0x924   :  { %2946 = vxpose.xlu2.b32.start.end [1/1] (short) %v2945_v30, 128 }
 0x927   :  { %v1288_v31 = vpop.f32.mrf.mxu2 }
 0x928   :  { %v1301_v32 = vpop.f32.mrf.mxu3 }
 0x9bd   :  { %v2947_v33 = vpop.trf.xlu2 }
 0x9be   :  { %v2948_v36 = vunpack.i.l.bf16 %v2947_v33  ;;  %v2951_v38 = vunpack.i.h.bf16 %v2947_v33 }
 0x9c5   :  { %v2952_v34 = vpop.trf.xlu2 }
 0x9c6   :  { %v2956_v43 = vunpack.i.h.bf16 %v2952_v34  ;;  %v2953_v44 = vunpack.i.l.bf16 %v2952_v34 }
 0x9cd   :  { %v2957_v27 = vpop.trf.xlu2 }
 0x9ce   :  { %v2961_v49 = vunpack.i.h.bf16 %v2957_v27  ;;  %v2958_v50 = vunpack.i.l.bf16 %v2957_v27 }
 0x9d5   :  { %v2962_v35 = vpop.trf.xlu2 }
 0x9d6   :  { %v2966_v56 = vunpack.i.h.bf16 %v2962_v35  ;;  %v2963_v57 = vunpack.i.l.bf16 %v2962_v35 }
 0x9dd   :  { %v2967_v37 = vpop.trf.xlu2 }
 0x9de   :  { %v2968_v40 = vunpack.i.l.bf16 %v2967_v37  ;;  %v2971_v28 = vunpack.i.h.bf16 %v2967_v37 }
 0x9e0   :  { %v3040_v41 = vpack.i.bf16 %v2968_v40, %v2948_v36  ;;  %v3648_v42 = vpack.i.bf16 %v2971_v28, %v2951_v38 }
 0x9e2   :  { %3041 = vxpose.xlu0.b32.start [1/4] (short) (narrow) %v3040_v41, 8 }
 0x9e5   :  { %v2972_v45 = vpop.trf.xlu2 }
 0x9e6   :  { %v2976_v39 = vunpack.i.h.bf16 %v2972_v45  ;;  %v2973_v46 = vunpack.i.l.bf16 %v2972_v45 }
 0x9e8   :  { %v3042_v47 = vpack.i.bf16 %v2973_v46, %v2953_v44  ;;  %v3068_v48 = vpack.i.bf16 %v2976_v39, %v2956_v43 }
 0x9ea   :  { %3043 = vxpose.xlu0.b32.cont [2/4] (short) (narrow) %v3042_v47, 8 }
 0x9ed   :  { %v2977_v51 = vpop.trf.xlu2 }
 0x9ee   :  { %v2981_v52 = vunpack.i.h.bf16 %v2977_v51  ;;  %v2978_v53 = vunpack.i.l.bf16 %v2977_v51 }
 0x9f0   :  { %v3044_v54 = vpack.i.bf16 %v2978_v53, %v2958_v50  ;;  %v3070_v55 = vpack.i.bf16 %v2981_v52, %v2961_v49 }
 0x9f2   :  { %3045 = vxpose.xlu0.b32.cont [3/4] (short) (narrow) %v3044_v54, 8 }
 0x9f5   :  { %v2982_v58 = vpop.trf.xlu2 }
 0x9f6   :  { %v2986_v59 = vunpack.i.h.bf16 %v2982_v58  ;;  %v2983_v60 = vunpack.i.l.bf16 %v2982_v58 }
 0x9f8   :  { %v3046_v61 = vpack.i.bf16 %v2983_v60, %v2963_v57  ;;  %v3072_v62 = vpack.i.bf16 %v2986_v59, %v2966_v56 }
 0x9fa   :  { %3047 = vxpose.xlu0.b32.end [4/4] (short) (narrow) %v3046_v61, 8 }
 0x9fd   :  { %v2987_v63 = vpop.trf.xlu2 }
 0x9fe   :  { %v2988_v4 = vunpack.i.l.bf16 %v2987_v63  ;;  %v2991_v11 = vunpack.i.h.bf16 %v2987_v63 }
 0xa05   :  { %v2992_v0 = vpop.trf.xlu2 }
 0xa06   :  { %v2996_v10 = vunpack.i.h.bf16 %v2992_v0  ;;  %v2993_v12 = vunpack.i.l.bf16 %v2992_v0 }
 0xa0d   :  { %v2997_v2 = vpop.trf.xlu2 }
 0xa0e   :  { %v3001_v13 = vunpack.i.h.bf16 %v2997_v2  ;;  %v2998_v22 = vunpack.i.l.bf16 %v2997_v2 }
 0xa15   :  { %v3002_v3 = vpop.trf.xlu2 }
 0xa16   :  { %v3006_v30 = vunpack.i.h.bf16 %v3002_v3  ;;  %v3003_v31 = vunpack.i.l.bf16 %v3002_v3 }
 0xa1d   :  { %v3007_v5 = vpop.trf.xlu2 }
 0xa1e   :  { %v3008_v6 = vunpack.i.l.bf16 %v3007_v5  ;;  %v3011_v7 = vunpack.i.h.bf16 %v3007_v5 }
 0xa20   :  { %v3027_v8 = vpack.i.bf16 %v3011_v7, %v2991_v11  ;;  %v3053_v9 = vpack.i.bf16 %v3008_v6, %v2988_v4  ;;  %v149_v7 = vld [vmem:[#allocation13 + $0x28] sm:$0xff] }
 0xa22   :  { %3028 = vxpose.xlu2.b32.start [1/4] (short) (narrow) %v3027_v8, 8  ;;  %3054 = vxpose.xlu1.b32.start [1/4] (short) (narrow) %v3053_v9, 8  ;;  %v1228_v8 = vperm.slane %v149_v7, 0 }
 0xa24   :  { %v1300_v9 = vadd.f32 %v3646_v29, %v1228_v8  ;;  %v2749_v8 = vld [vmem:[#allocation7 + $0x48] sm:$0xff] }
 0xa25   :  { %v3012_v15 = vpop.trf.xlu2 }
 0xa26   :  { %v3016_v16 = vunpack.i.h.bf16 %v3012_v15  ;;  %v3013_v17 = vunpack.i.l.bf16 %v3012_v15 }
 0xa28   :  { %v3029_v19 = vpack.i.bf16 %v3016_v16, %v2996_v10  ;;  %v3055_v21 = vpack.i.bf16 %v3013_v17, %v2993_v12 }
 0xa2a   :  { %3030 = vxpose.xlu2.b32.cont [2/4] (short) (narrow) %v3029_v19, 8  ;;  %3056 = vxpose.xlu1.b32.cont [2/4] (short) (narrow) %v3055_v21, 8 }
 0xa2d   :  { %v3017_v14 = vpop.trf.xlu2 }
 0xa2e   :  { %v3021_v23 = vunpack.i.h.bf16 %v3017_v14  ;;  %v3018_v24 = vunpack.i.l.bf16 %v3017_v14 }
 0xa30   :  { %v3031_v25 = vpack.i.bf16 %v3021_v23, %v3001_v13  ;;  %v3057_v26 = vpack.i.bf16 %v3018_v24, %v2998_v22 }
 0xa32   :  { %3032 = vxpose.xlu2.b32.cont [3/4] (short) (narrow) %v3031_v25, 8  ;;  %3058 = vxpose.xlu1.b32.cont [3/4] (short) (narrow) %v3057_v26, 8 }
 0xa35   :  { %v3022_v32 = vpop.trf.xlu2 }
 0xa36   :  { %v3026_v33 = vunpack.i.h.bf16 %v3022_v32  ;;  %v3023_v34 = vunpack.i.l.bf16 %v3022_v32 }
 0xa38   :  { %v3033_v27 = vpack.i.bf16 %v3026_v33, %v3006_v30  ;;  %v3059_v35 = vpack.i.bf16 %v3023_v34, %v3003_v31 }
 0xa3a   :  { %3034 = vxpose.xlu2.b32.end [4/4] (short) (narrow) %v3033_v27, 8  ;;  %3060 = vxpose.xlu1.b32.end [4/4] (short) (narrow) %v3059_v35, 8 }
 0xa42   :  { %3067 = vxpose.xlu1.b32.start [1/4] (short) (narrow) %v3648_v42, 8 }
 0xa4a   :  { %3069 = vxpose.xlu1.b32.cont [2/4] (short) (narrow) %v3068_v48, 8 }
 0xa52   :  { %3071 = vxpose.xlu1.b32.cont [3/4] (short) (narrow) %v3070_v55, 8 }
 0xa5a   :  { %3073 = vxpose.xlu1.b32.end [4/4] (short) (narrow) %v3072_v62, 8 }
 0xa86   :  { %v3048_v36 = vpop.trf.xlu0 }
 0xa87   :  { %v3052_v37 = vunpack.i.h.bf16 %v3048_v36  ;;  %v3049_v38 = vunpack.i.l.bf16 %v3048_v36 }
 0xa89   :  { %v1787_v40 = vpack.c.bf16 %v3049_v38, %v3049_v38  ;;  %v1788_v28 = vpack.c.bf16 %v3052_v37, %v3052_v37 }
 0xa8b   :  { %v1799_v41 = vsel %vm195_vm0, %v1787_v40, 0  ;;  %v1818_v43 = vsel %vm195_vm0, %v1788_v28, 0 }
 0xa8c   :  { %1808 = vmatpush.bf16.xpose.msrb.mxu0 %v1799_v41  ;;  %1827 = vmatpush.bf16.xpose.msrb.mxu1 %v1818_v43 }
 0xabb   :  { %v3035_v44 = vpop.trf.xlu2 }
 0xabc   :  { %v3039_v50 = vunpack.i.h.bf16 %v3035_v44  ;;  %v3036_v51 = vunpack.i.l.bf16 %v3035_v44 }
 0xabe   :  { %v1786_v52 = vpack.c.bf16 %v3039_v50, %v3039_v50  ;;  %v1785_v53 = vpack.c.bf16 %v3036_v51, %v3036_v51 }
 0xac6   :  { %v3061_v45 = vpop.trf.xlu1 }
 0xac7   :  { %v3065_v39 = vunpack.i.h.bf16 %v3061_v45  ;;  %v3062_v46 = vunpack.i.l.bf16 %v3061_v45 }
 0xac9   :  { %v1789_v47 = vpack.c.bf16 %v3062_v46, %v3062_v46  ;;  %v1790_v42 = vpack.c.bf16 %v3065_v39, %v3065_v39 }
 0xacb   :  { %v1837_v48 = vsel %vm195_vm0, %v1789_v47, 0  ;;  %v1856_v49 = vsel %vm195_vm0, %v1790_v42, 0 }
 0xacc   :  { %1846 = vmatpush.bf16.xpose.msrb.mxu2 %v1837_v48  ;;  %1865 = vmatpush.bf16.xpose.msrb.mxu3 %v1856_v49 }
 0xad3   :  { %2609 = vmatmul.msk.bf16.vlgmr.msrb.gmra.mxu2 %vm195_vm0, %v1785_v53  ;;  %2610 = vmatmul.msk.bf16.vlgmr.msrb.gmra.mxu3 %vm195_vm0, %v1786_v52 }
 0xae6   :  { %v3074_v54 = vpop.trf.xlu1 }
 0xae7   :  { %v3078_v55 = vunpack.i.h.bf16 %v3074_v54  ;;  %v3075_v56 = vunpack.i.l.bf16 %v3074_v54 }
 0xae9   :  { %v1784_v57 = vpack.c.bf16 %v3078_v55, %v3078_v55  ;;  %v1783_v58 = vpack.c.bf16 %v3075_v56, %v3075_v56 }
 0xaeb   :  { %2607 = vmatmul.msk.bf16.vlgmr.msrb.gmra.mxu0 %vm195_vm0, %v1783_v58  ;;  %2608 = vmatmul.msk.bf16.vlgmr.msrb.gmra.mxu1 %vm195_vm0, %v1784_v57 }
 0xb56   :  { %v1848_v59 = vpop.f32.mrf.mxu2  ;;  %v1867_v60 = vpop.f32.mrf.mxu3 }
 0xb57   :  { %v1877_v61 = vsel %vm806_vm1, %v1848_v59, -inf  ;;  %v1880_v6 = vsel %vm806_vm1, %v1867_v60, -inf }
 0xb58   :  { %1878 = vmax.xlane.f32.xlu0 %v1877_v61 }
 0xb5e   :  { %v1850_v62 = vpop.f32.mrf.mxu2  ;;  %v1869_v63 = vpop.f32.mrf.mxu3 }
 0xb68   :  { %v1810_v0 = vpop.f32.mrf.mxu0  ;;  %v1829_v2 = vpop.f32.mrf.mxu1 }
 0xb69   :  { %v1874_v3 = vsel %vm806_vm1, %v1829_v2, -inf  ;;  %v1871_v4 = vsel %vm806_vm1, %v1810_v0, -inf }
 0xb6a   :  { %1875 = vmax.xlane.f32.xlu1 %v1874_v3  ;;  %1872 = vmax.xlane.f32.xlu2 %v1871_v4 }
 0xb70   :  { %v1812_v5 = vpop.f32.mrf.mxu0  ;;  %v1831_v11 = vpop.f32.mrf.mxu1 }
 0xb72   :  { %1881 = vmax.xlane.f32.xlu1 %v1880_v6 }
 0xb81   :  { %1367 = vxpose.xlu0.b32.start.end [1/1] (short) %v1300_v9, 128  ;;  %v2751_v9 = vld [vmem:[#allocation7 + $0x58] sm:$0xff] }
 0xbcb   :  { %v1879_v21 = vpop.xlane.xlu0 %1878 }
 0xbcc   :  { %v1885_v22 = vsub.f32 %v1848_v59, %v1879_v21 }
 0xbce   :  { %v1891_v23 = vmul.f32 1.442695, %v1885_v22 }
 0xbdd   :  { %v1873_v10 = vpop.xlane.xlu2 %1872  ;;  %v1876_v12 = vpop.xlane.xlu1 %1875 }
 0xbde   :  { %v1883_v15 = vsub.f32 %v1810_v0, %v1873_v10  ;;  %v1884_v17 = vsub.f32 %v1829_v2, %v1876_v12 }
 0xbe0   :  { %v1887_v16 = vmul.f32 1.442695, %v1883_v15  ;;  %v1889_v19 = vmul.f32 1.442695, %v1884_v17 }
 0xbe2   :  { %3127 = vpow2.f32 %v1887_v16 }
 0xbe3   :  { %3129 = vpow2.f32 %v1889_v19 }
 0xbe4   :  { %3131 = vpow2.f32 %v1891_v23 }
 0xbe5   :  { %v1882_v24 = vpop.xlane.xlu1 %1881 }
 0xbe6   :  { %v1886_v29 = vsub.f32 %v1867_v60, %v1882_v24 }
 0xbe8   :  { %v3128_v13 = vpop.eup %3127  ;;  %v1893_v30 = vmul.f32 1.442695, %v1886_v29 }
 0xbe9   :  { %v1895_v14 = vsel %vm806_vm1, %v3128_v13, 0.0  ;;  %v3130_v25 = vpop.eup %3129 }
 0xbea   :  { %1896 = vadd.xlane.f32.xlu1 %v1895_v14  ;;  %v1898_v26 = vsel %vm806_vm1, %v3130_v25, 0.0  ;;  %v3666_v31 = vpop.eup %3131  ;;  %3133 = vpow2.f32 %v1893_v30  ;;  %v2748_v30 = vld [vmem:[#allocation7 + $0x40] sm:$0xff] }
 0xbeb   :  { %v1901_v32 = vsel %vm806_vm1, %v3666_v31, 0.0 }
 0xbf0   :  { %v3670_v33 = vpop.eup %3133 }
 0xbf1   :  { %v1904_v34 = vsel %vm806_vm1, %v3670_v33, 0.0 }
 0xbf2   :  { %1899 = vadd.xlane.f32.xlu1 %v1898_v26 }
 0xbfa   :  { %1902 = vadd.xlane.f32.xlu1 %v1901_v32  ;;  %v2750_v32 = vld [vmem:[#allocation7 + $0x50] sm:$0xff] }
 0xc02   :  { %1905 = vadd.xlane.f32.xlu1 %v1904_v34 }
 0xc25   :  { %v1383_v27 = vpop.trf.xlu0 }
 0xc2d   :  { %v1384_v35 = vpop.trf.xlu0 }
 0xc35   :  { %v1385_v36 = vpop.trf.xlu0 }
 0xc3d   :  { %v1386_v37 = vpop.trf.xlu0 }
 0xc45   :  { %v1387_v38 = vpop.trf.xlu0 }
 0xc46   :  { %v3092_v40 = vpack.i.bf16 %v1387_v38, %v1383_v27 }
 0xc48   :  { %3093 = vxpose.xlu0.b32.start [1/4] (short) (narrow) %v3092_v40, 8  ;;  %v2752_v40 = vld [vmem:[#allocation7 + $0x60] sm:$0xff] }
 0xc4d   :  { %v1388_v28 = vpop.trf.xlu0 }
 0xc4e   :  { %v3094_v41 = vpack.i.bf16 %v1388_v28, %v1384_v35  ;;  %v2754_v28 = vld [vmem:[#allocation7 + $0x70] sm:$0xff] }
 0xc50   :  { %3095 = vxpose.xlu0.b32.cont [2/4] (short) (narrow) %v3094_v41, 8 }
 0xc55   :  { %v1389_v43 = vpop.trf.xlu0 }
 0xc56   :  { %v3096_v44 = vpack.i.bf16 %v1389_v43, %v1385_v36 }
 0xc58   :  { %3097 = vxpose.xlu0.b32.cont [3/4] (short) (narrow) %v3096_v44, 8 }
 0xc5d   :  { %v1390_v45 = vpop.trf.xlu0  ;;  %v1897_v57 = vpop.xlane.xlu1 %1896 }
 0xc5e   :  { %v3098_v39 = vpack.i.bf16 %v1390_v45, %v1386_v37  ;;  %3135 = vrcp.f32 %v1897_v57 }
 0xc60   :  { %3099 = vxpose.xlu0.b32.end [4/4] (short) (narrow) %v3098_v39, 8 }
 0xc64   :  { %v3136_v59 = vpop.eup %3135 }
 0xc65   :  { %v1391_v46 = vpop.trf.xlu0  ;;  %v1900_v58 = vpop.xlane.xlu1 %1899  ;;  %v1911_v0 = vmul.f32 %v3136_v59, %v3128_v13 }
 0xc66   :  { %3137 = vrcp.f32 %v1900_v58 }
 0xc67   :  { %v1915_v6 = vpack.c.bf16 %v1911_v0, %v1911_v0 }
 0xc6c   :  { %v3138_v60 = vpop.eup %3137 }
 0xc6d   :  { %v1392_v47 = vpop.trf.xlu0  ;;  %v1912_v2 = vmul.f32 %v3138_v60, %v3130_v25  ;;  %v1903_v10 = vpop.xlane.xlu1 %1902 }
 0xc6e   :  { %3139 = vrcp.f32 %v1903_v10 }
 0xc6f   :  { %v1916_v7 = vpack.c.bf16 %v1912_v2, %v1912_v2 }
 0xc74   :  { %v3140_v15 = vpop.eup %3139 }
 0xc75   :  { %v1393_v42 = vpop.trf.xlu0  ;;  %v1906_v12 = vpop.xlane.xlu1 %1905  ;;  %v1913_v13 = vmul.f32 %v3140_v15, %v3666_v31  ;;  %v2753_v31 = vld [vmem:[#allocation7 + $0x68] sm:$0xff] }
 0xc76   :  { %3141 = vrcp.f32 %v1906_v12 }
 0xc77   :  { %v1917_v29 = vpack.c.bf16 %v1913_v13, %v1913_v13 }
 0xc7c   :  { %v3142_v16 = vpop.eup %3141 }
 0xc7d   :  { %v1394_v48 = vpop.trf.xlu0  ;;  %v1914_v22 = vmul.f32 %v3142_v16, %v3670_v33  ;;  %v2755_v33 = vld [vmem:[#allocation7 + $0x78] sm:$0xff] }
 0xc7f   :  { %v1918_v26 = vpack.c.bf16 %v1914_v22, %v1914_v22 }
 0xc85   :  { %v1395_v49 = vpop.trf.xlu0 }
 0xc86   :  { %v3079_v50 = vpack.i.bf16 %v1395_v49, %v1391_v46 }
 0xc88   :  { %3080 = vxpose.xlu1.b32.start [1/4] (short) (narrow) %v3079_v50, 8 }
 0xc8d   :  { %v1396_v51 = vpop.trf.xlu0 }
 0xc8e   :  { %v3081_v52 = vpack.i.bf16 %v1396_v51, %v1392_v47 }
 0xc90   :  { %3082 = vxpose.xlu1.b32.cont [2/4] (short) (narrow) %v3081_v52, 8 }
 0xc95   :  { %v1397_v53 = vpop.trf.xlu0 }
 0xc96   :  { %v3083_v54 = vpack.i.bf16 %v1397_v53, %v1393_v42 }
 0xc98   :  { %3084 = vxpose.xlu1.b32.cont [3/4] (short) (narrow) %v3083_v54, 8  ;;  %v2131_v54 = vperm.slane %v3643_v20, 1 }
 0xc9d   :  { %v1398_v55 = vpop.trf.xlu0 }
 0xc9e   :  { %v3085_v56 = vpack.i.bf16 %v1398_v55, %v1394_v48 }
 0xca0   :  { %3086 = vxpose.xlu1.b32.end [4/4] (short) (narrow) %v3085_v56, 8 }
 0xcec   :  { %v3100_v61 = vpop.trf.xlu0 }
 0xced   :  { %v3104_v62 = vunpack.i.h.bf16 %v3100_v61  ;;  %v3101_v63 = vunpack.i.l.bf16 %v3100_v61 }
 0xcef   :  { %v1792_v3 = vpack.c.bf16 %v3104_v62, %v3104_v62  ;;  %v1791_v4 = vpack.c.bf16 %v3101_v63, %v3101_v63 }
 0xcf1   :  { %v1923_v5 = vsel %vm858_vm2, %v1791_v4, 0  ;;  %v1942_v11 = vsel %vm858_vm2, %v1792_v3, 0  ;;  %v2757_v3 = vld [vmem:[#allocation8 + $0x18] sm:$0xff]  ;;  %v2756_v4 = vld [vmem:[#allocation8 + $0x10] sm:$0xff] }
 0xcf2   :  { %1932 = vmatpush.bf16.msra.mxu0 %v1923_v5  ;;  %1951 = vmatpush.bf16.msra.mxu1 %v1942_v11 }
 0xcf5   :  { %2611 = vmatmul.msk.bf16.vlgmr.msra.gmra.mxu0 %vm806_vm1, %v1915_v6  ;;  %2612 = vmatmul.msk.bf16.vlgmr.msra.gmra.mxu1 %vm806_vm1, %v1916_v7  ;;  %v2760_v6 = vld [vmem:[%s3734_s5 + $0x30] sm:$0xff] }
 0xcf6   :  { %2037 = vmatpush.bf16.msrb.mxu0 %v2749_v8  ;;  %2065 = vmatpush.bf16.msrb.mxu1 %v2751_v9 }
 0xcfa   :  { %2038 = vmatpush.bf16.msrb.mxu0 %v2748_v30  ;;  %2066 = vmatpush.bf16.msrb.mxu1 %v2750_v32 }
 0xcfe   :  { %2188 = vmatpush.bf16.msra.mxu0 %v2757_v3 }
 0xd02   :  { %2189 = vmatpush.bf16.msra.mxu0 %v2756_v4 }
 0xd2c   :  { %v3087_v17 = vpop.trf.xlu1 }
 0xd2d   :  { %v3091_v19 = vunpack.i.h.bf16 %v3087_v17  ;;  %v3088_v21 = vunpack.i.l.bf16 %v3087_v17  ;;  %v2156_v17 = vperm.slane %v3643_v20, 2 }
 0xd2f   :  { %v1794_v14 = vpack.c.bf16 %v3091_v19, %v3091_v19  ;;  %v1793_v23 = vpack.c.bf16 %v3088_v21, %v3088_v21  ;;  %v2158_v21 = vperm.slane %v3643_v20, 3 }
 0xd31   :  { %v1961_v24 = vsel %vm858_vm2, %v1793_v23, 0  ;;  %v1980_v25 = vsel %vm858_vm2, %v1794_v14, 0 }
 0xd32   :  { %1970 = vmatpush.bf16.msra.mxu2 %v1961_v24  ;;  %1989 = vmatpush.bf16.msra.mxu3 %v1980_v25  ;;  %v2759_v24 = vld [vmem:[%s3734_s5 + $0x28] sm:$0xff]  ;;  %v2758_v25 = vld [vmem:[%s3734_s5 + $0x20] sm:$0xff] }
 0xd35   :  { %2613 = vmatmul.msk.bf16.vlgmr.msra.gmra.mxu2 %vm806_vm1, %v1917_v29  ;;  %2614 = vmatmul.msk.bf16.vlgmr.msra.gmra.mxu3 %vm806_vm1, %v1918_v26  ;;  %v2166_v29 = vperm.slane %v3643_v20, 4 }
 0xd36   :  { %2093 = vmatpush.bf16.msrb.mxu2 %v2753_v31  ;;  %2121 = vmatpush.bf16.msrb.mxu3 %v2755_v33 }
 0xd3a   :  { %2094 = vmatpush.bf16.msrb.mxu2 %v2752_v40  ;;  %2122 = vmatpush.bf16.msrb.mxu3 %v2754_v28 }
 0xd72   :  { %v1934_v34 = vpop.f32.mrf.mxu0  ;;  %v1953_v27 = vpop.f32.mrf.mxu1 }
 0xd73   :  { %v1995_v35 = vpack.c.bf16 %v1934_v34, %v1934_v34  ;;  %v1996_v36 = vpack.c.bf16 %v1953_v27, %v1953_v27  ;;  %v2206_v34 = vperm.slane %v3643_v20, 5 }
 0xd75   :  { %2623 = vmatmul.msk.bf16.vlgmr.msrb.gmra.mxu0 %vm195_vm0, %v1995_v35  ;;  %2632 = vmatmul.msk.bf16.vlgmr.msrb.gmra.mxu1 %vm195_vm0, %v1996_v36 }
 0xd7a   :  { %v1936_v37 = vpop.f32.mrf.mxu0  ;;  %v1955_v38 = vpop.f32.mrf.mxu1 }
 0xdb8   :  { %v1972_v41 = vpop.f32.mrf.mxu2  ;;  %v1991_v43 = vpop.f32.mrf.mxu3 }
 0xdb9   :  { %v1997_v44 = vpack.c.bf16 %v1972_v41, %v1972_v41  ;;  %v1998_v45 = vpack.c.bf16 %v1991_v43, %v1991_v43 }
 0xdbb   :  { %2641 = vmatmul.msk.bf16.vlgmr.msrb.gmra.mxu2 %vm195_vm0, %v1997_v44  ;;  %2650 = vmatmul.msk.bf16.vlgmr.msrb.gmra.mxu3 %vm195_vm0, %v1998_v45  ;;  %v2763_v45 = vld [vmem:[#allocation10 + $0x8] sm:$0xff] }
 0xdbc   :  { %2301 = vmatpush.bf16.msra.mxu2 %v2763_v45 }
 0xdc0   :  { %v1974_v39 = vpop.f32.mrf.mxu2  ;;  %v1993_v46 = vpop.f32.mrf.mxu3 }
 0xdc1   :  { %v2762_v39 = vld [vmem:[#allocation10] sm:$0xff] }
 0xdc2   :  { %2302 = vmatpush.bf16.msra.mxu2 %v2762_v39 }
 0xdf2   :  { %v2040_v47 = vpop.f32.mrf.mxu0  ;;  %v2068_v42 = vpop.f32.mrf.mxu1 }
 0xdf3   :  { %v2128_v48 = vadd.f32 %v2068_v42, %v2040_v47 }
 0xdfa   :  { %v2042_v49 = vpop.f32.mrf.mxu0  ;;  %v2070_v50 = vpop.f32.mrf.mxu1 }
 0xe3e   :  { %v2096_v51 = vpop.f32.mrf.mxu2  ;;  %v2124_v52 = vpop.f32.mrf.mxu3 }
 0xe3f   :  { %v2129_v53 = vadd.f32 %v2128_v48, %v2096_v51 }
 0xe41   :  { %v2130_v55 = vadd.f32 %v2129_v53, %v2124_v52 }
 0xe43   :  { %v2132_v56 = vadd.f32 %v2131_v54, %v2130_v55  ;;  %v2270_v54 = vperm.slane %v3643_v20, 6 }
 0xe45   :  { %v2133_v57 = vadd.f32 %v2132_v56, %v3636_v18  ;;  %v2761_v18 = vld [vmem:[%s3734_s5 + $0x38] sm:$0xff]  ;;  %s3387_s5 = smov [#allocation15]  }
 0xe46   :  { %v2098_v58 = vpop.f32.mrf.mxu2  ;;  %v2126_v59 = vpop.f32.mrf.mxu3  ;;  %2238 = vmatpush.bf16.msra.mxu1 %v2761_v18  ;;  %s2455_s12 = sshll.u32 %s3387_s5, 4  ;;  %s2456_s12 = int_to_ptr.vmem [resolvable:$true] %s2455_s12 }
 0xe47   :  { %v2134_v60 = vsel %vm195_vm0, %v2133_v57, 0.0 }
 0xe48   :  { %2135 = vadd.xlane.f32.xlu2 %v2134_v60  ;;  %v2765_v60 = vld [vmem:[#allocation10 + $0x18] sm:$0xff] }
 0xe49   :  { %2337 = vmatpush.bf16.msra.mxu3 %v2765_v60 }
 0xe4a   :  { %2239 = vmatpush.bf16.msra.mxu1 %v2760_v6 }
 0xe4e   :  { %2240 = vmatpush.bf16.msra.mxu1 %v2759_v24 }
 0xe52   :  { %2241 = vmatpush.bf16.msra.mxu1 %v2758_v25 }
 0xebb   :  { %v2136_v61 = vpop.xlane.xlu2 %2135 }
 0xebc   :  { %v2137_v62 = vmul.f32 %v2136_v61, %v3571_v1  ;;  %v2764_v61 = vld [vmem:[#allocation10 + $0x10] sm:$0xff] }
 0xebd   :  { %2338 = vmatpush.bf16.msra.mxu3 %v2764_v61 }
 0xebe   :  { %v2138_v63 = vsub.f32 %v2133_v57, %v2137_v62  ;;  %v2272_v57 = vperm.slane %v3643_v20, 7  ;;  %v143_v62 = vld [vmem:[#allocation5] sm:$0xff] }
 0xec0   :  { %v2139_v0 = vmul.f32 %v2138_v63, %v2138_v63 }
 0xec2   :  { %v2140_v2 = vsel %vm195_vm0, %v2139_v0, 0.0  ;;  %v150_v0 = vld [vmem:[#allocation13 + $0x30] sm:$0xff] }
 0xec3   :  { %2141 = vadd.xlane.f32.xlu2 %v2140_v2  ;;  %v2279_v2 = vperm.slane %v150_v0, 0 }
 0xf36   :  { %v2142_v5 = vpop.xlane.xlu2 %2141 }
 0xf37   :  { %v2143_v11 = vmul.f32 %v2142_v5, %v3571_v1 }
 0xf39   :  { %v2144_v7 = vadd.f32 1e-05, %v2143_v11  ;;  %v2768_v11 = vld [vmem:[#allocation11 + $0x10] sm:$0xff] }
 0xf3b   :  { %3143 = vrsqrt.f32 %v2144_v7  ;;  %vm2151_vm12 = vweird.f32 %v2144_v7 }
 0xf41   :  { %v3144_v8 = vpop.eup %3143 }
 0xf42   :  { %v2146_v9 = vmul.f32 %v3144_v8, %v2144_v7  ;;  %vm2152_vm11 = vweird.f32 %v3144_v8 }
 0xf43   :  { %vm2153_vm13 = vmor %vm2151_vm12, %vm2152_vm11 }
 0xf44   :  { %v2147_v10 = vmul.f32 %v3144_v8, %v2146_v9  ;;  %v2766_v9 = vld [vmem:[#allocation11] sm:$0xff] }
 0xf46   :  { %v2148_v12 = vmul.f32 0.5, %v2147_v10  ;;  %v2315_v10 = vperm.slane %v150_v0, 1 }
 0xf48   :  { %v2149_v15 = vsub.f32 1.5, %v2148_v12 }
 0xf4a   :  { %v2150_v16 = vmul.f32 %v3144_v8, %v2149_v15 }
 0xf4c   :  { %v2154_v19 = vsel %vm2153_vm13, %v3144_v8, %v2150_v16  ;;  %v2767_v8 = vld [vmem:[#allocation11 + $0x8] sm:$0xff] }
 0xf4d   :  { %v2155_v13 = vmul.f32 %v2154_v19, %v2138_v63  ;;  %v2769_v63 = vld [vmem:[#allocation11 + $0x18] sm:$0xff]  ;;  %2372 = vmatpush.bf16.msrb.mxu0 %v2767_v8 }
 0xf4e   :  { %2431 = vmatpush.bf16.msrb.mxu2 %v2769_v63 }
 0xf4f   :  { %v2157_v22 = vmul.f32 %v2156_v17, %v2155_v13  ;;  %v2409_v13 = vperm.slane %v150_v0, 3 }
 0xf51   :  { %v2159_v14 = vadd.f32 %v2158_v21, %v2157_v22  ;;  %2373 = vmatpush.bf16.msrb.mxu0 %v2766_v9 }
 0xf52   :  { %2432 = vmatpush.bf16.msrb.mxu2 %v2768_v11 }
 0xf53   :  { %v2160_v23 = vpack.c.bf16 %v2159_v14, %v2159_v14 }
 0xf55   :  { %2659 = vmatmul.msk.bf16.vlgmr.msra.gmra.mxu0 %vm195_vm0, %v2160_v23  ;;  %v2350_v23 = vperm.slane %v150_v0, 2 }
 0xfd2   :  { %v2191_v26 = vpop.f32.mrf.mxu0 }
 0xfd3   :  { %v2192_v30 = vadd.f32 %v2191_v26, %v2166_v29 }
 0xfd5   :  { %v2195_v32 = vmax.f32 %v2192_v30, 0.0 }
 0xfd7   :  { %v2196_v31 = vpack.c.bf16 %v2195_v32, %v2195_v32 }
 0xfd9   :  { %2684 = vmatmul.msk.bf16.vlgmr.msra.gmra.mxu1 %vm1172_vm7, %v2196_v31 }
 0xfda   :  { %v2193_v33 = vpop.f32.mrf.mxu0 }
0x1056   :  { %v2243_v27 = vpop.f32.mrf.mxu1 }
0x1057   :  { %v2244_v35 = vadd.f32 %v2243_v27, %v2206_v34 }
0x1059   :  { %v2247_v36 = vadd.f32 %v2244_v35, %v2159_v14 }
0x105b   :  { %v2248_v37 = vsel %vm195_vm0, %v2247_v36, 0.0 }
0x105c   :  { %2249 = vadd.xlane.f32.xlu2 %v2248_v37 }
0x105e   :  { %v2245_v38 = vpop.f32.mrf.mxu1 }
0x10cf   :  { %v2250_v40 = vpop.xlane.xlu2 %2249 }
0x10d0   :  { %v2251_v28 = vmul.f32 %v2250_v40, %v3571_v1 }
0x10d2   :  { %v2252_v41 = vsub.f32 %v2247_v36, %v2251_v28 }
0x10d4   :  { %v2253_v43 = vmul.f32 %v2252_v41, %v2252_v41 }
0x10d6   :  { %v2254_v44 = vsel %vm195_vm0, %v2253_v43, 0.0 }
0x10d7   :  { %2255 = vadd.xlane.f32.xlu2 %v2254_v44 }
0x114a   :  { %v2256_v46 = vpop.xlane.xlu2 %2255 }
0x114b   :  { %v2257_v47 = vmul.f32 %v2256_v46, %v3571_v1 }
0x114d   :  { %v2258_v42 = vadd.f32 1e-05, %v2257_v47 }
0x114f   :  { %3145 = vrsqrt.f32 %v2258_v42  ;;  %vm2265_vm15 = vweird.f32 %v2258_v42 }
0x1155   :  { %v3146_v48 = vpop.eup %3145 }
0x1156   :  { %v2260_v49 = vmul.f32 %v3146_v48, %v2258_v42  ;;  %vm2266_vm14 = vweird.f32 %v3146_v48 }
0x1157   :  { %vm2267_vm2 = vmor %vm2265_vm15, %vm2266_vm14 }
0x1158   :  { %v2261_v50 = vmul.f32 %v3146_v48, %v2260_v49 }
0x115a   :  { %v2262_v51 = vmul.f32 0.5, %v2261_v50 }
0x115c   :  { %v2263_v52 = vsub.f32 1.5, %v2262_v51 }
0x115e   :  { %v2264_v53 = vmul.f32 %v3146_v48, %v2263_v52 }
0x1160   :  { %v2268_v55 = vsel %vm2267_vm2, %v3146_v48, %v2264_v53 }
0x1161   :  { %v2269_v56 = vmul.f32 %v2268_v55, %v2252_v41 }
0x1163   :  { %v2271_v58 = vmul.f32 %v2270_v54, %v2269_v56 }
0x1165   :  { %v2273_v59 = vadd.f32 %v2272_v57, %v2271_v58 }
0x1167   :  { %v2274_v1 = vpack.c.bf16 %v2273_v59, %v2273_v59  ;;  %2398 = vmatpush.msrb.mxu1 %v2273_v59 }
0x1168   :  { %2712 = vmatmul.msk.f32.vlgmr.msrb.gmra.mxu1 %vm806_vm1, %v143_v62 }
0x1169   :  { %2693 = vmatmul.msk.bf16.vlgmr.msra.gmra.mxu2 %vm195_vm0, %v2274_v1 }
0x11e5   :  { %v2400_v6 = vpop.f32.mrf.mxu1 }
0x11e6   :  { %v2403_v7 = vpack.c.bf16 %v2400_v6, %v2400_v6 }
0x11e8   :  { %2721 = vmatmul.msk.bf16.vlgmr.msrb.gmra.mxu2 %vm195_vm0, %v2403_v7 }
0x11ec   :  { %v2304_v3 = vpop.f32.mrf.mxu2 }
0x11ed   :  { %v2305_v4 = vadd.f32 %v2304_v3, %v2279_v2 }
0x11ef   :  { %v2308_v20 = vmax.f32 %v2305_v4, 0.0 }
0x11f1   :  { %v2309_v18 = vpack.c.bf16 %v2308_v20, %v2308_v20 }
0x11f3   :  { %2702 = vmatmul.msk.bf16.vlgmr.msra.gmra.mxu3 %vm195_vm0, %v2309_v18 }
0x11f4   :  { %v2306_v5 = vpop.f32.mrf.mxu2 }
0x126b   :  { %v2434_v21 = vpop.f32.mrf.mxu2 }
0x126c   :  { %v2435_v14 = vadd.f32 %v2434_v21, %v2409_v13 }
0x126e   :  { %2438 = vst [vmem:[#allocation15] sm:$0xff] %v2435_v14 }
0x126f   :  { %2460 = dma.vmem_to_hbm [thread:$0]  %s2456_s12, 128, %s2458_s7, [#allocation16]  }
0x1273   :  { %v2436_v22 = vpop.f32.mrf.mxu2 }
0x1276   :  { %v2340_v12 = vpop.f32.mrf.mxu3 }
0x1277   :  { %v2341_v15 = vadd.f32 %v2340_v12, %v2315_v10 }
0x1279   :  { %v2344_v16 = vmax.f32 %v2341_v15, 0.0 }
0x127b   :  { %v2345_v17 = vpack.c.bf16 %v2344_v16, %v2344_v16 }
0x127d   :  { %2711 = vmatmul.msk.bf16.vlgmr.msrb.gmra.mxu0 %vm195_vm0, %v2345_v17 }
0x127e   :  { %v2342_v19 = vpop.f32.mrf.mxu3 }
0x12fa   :  { %v2375_v24 = vpop.f32.mrf.mxu0 }
0x12fb   :  { %v2376_v25 = vadd.f32 %v2375_v24, %v2350_v23 }
0x12fd   :  { %2379 = vst [vmem:[#allocation14] sm:$0xff] %v2376_v25 }
0x12fe   :  { %2449 = dma.vmem_to_hbm [thread:$0]  %s2445_s16, 128, %s2447_s0, [#allocation4]  }
0x1302   :  { %v2377_v29 = vpop.f32.mrf.mxu0 }
0x1303   :  { %3371 = dma.done.wait [#allocation4], 128  }
0x1304   :  { %3372 = vsyncadd [#allocation4], 4294967168 }
0x1305   :  { %3373 = dma.done.wait [#allocation16], 128  }
0x1306   :  { %3374 = vsyncadd [#allocation16], 4294967168 }
0x1307   :  { %2469 = vsyncpa [#allocation3], 1 }
0x1308   :  { %2470 = vsyncpa [#allocation6], 1 }
0x1309   :  { %2471 = vsyncpa [#allocation9], 1 }
0x130a   :  { %2472 = vsyncpa [#allocation12], 1 }
0x130b   :  { %2473 = vsyncpa [#allocation4], 1 }
0x130c   :  { %2474 = vsyncpa [#allocation16], 1 }

</bundles_post_ra>
